<compile_context>
chip_gen: v7x
topology: tpu7x:2x2x1
jax: 0.10.0
libtpu: 0.0.40
codegen_flags: <defaults>
</compile_context>

<pallas_src>
import functools

import numpy as np
import jax
import jax.numpy as jnp
from jax import lax
from jax.experimental import pallas as pl
from jax.experimental.pallas import tpu as pltpu


def _round_up(x, m):
    return ((x + m - 1) // m) * m


def _choose_tile_rows(hp, w, wp, n_batch, cin, cout,
                      vmem_block_budget=8 * 1024 * 1024):
    """Rows of padded output per grid step (multiple of 8, VMEM-budgeted)."""
    lane = 128
    w_in = _round_up(max(w, 1), lane)
    w_out = _round_up(wp, lane)
    # double-buffered input/output blocks + in-kernel working copies, per row
    bytes_per_row = 4 * (2 * cin * w_in + 2 * cout * w_out
                         + 3 * cin * w_out + 2 * w_out)
    th = (vmem_block_budget // bytes_per_row) // 8 * 8
    th = max(8, min(th, max(8, (hp // 8) * 8)))
    if n_batch == 1 and hp > 8:
        # keep >= 2 row blocks so both v7x TensorCores get independent work
        th = min(th, max(8, ((hp - 1) // 8) * 8))
    return th


# ----------------------------------------------------------------------------
# Fused kernel: unpadded input in, padded output out (single HBM pass).
# ----------------------------------------------------------------------------
def _hardsig_conv1x1_fused_kernel(w_ref, b_ref, x_ref, halo_ref, o_ref, *, h_in):
    """w_ref: (Cout,Cin) SMEM (weight/6); b_ref: (Cout,) SMEM ((bias+3)/6);
    x_ref: (1,Cin,TH,W) unpadded input rows [r*TH, r*TH+TH);
    halo_ref: (1,1,Cin,1,W) unpadded input row clip(r*TH-1, 0, H-1);
    o_ref: (1,Cout,TH,Wp) padded output rows [r*TH, r*TH+TH), Wp = W+2."""
    r = pl.program_id(1)
    cin, th, w = x_ref.shape[1], x_ref.shape[2], x_ref.shape[3]
    cout = o_ref.shape[1]

    xa = x_ref[0]            # (Cin, TH, W)
    halo = halo_ref[0, 0]    # (Cin, 1, W)

    # Output row t of this block is padded row (r*TH + t); its conv source is
    # input row (r*TH + t - 1): shift rows down by one, first row from halo.
    x_src = jnp.concatenate([halo, xa[:, : th - 1, :]], axis=1)      # (Cin,TH,W)

    # Rows whose source lies outside [0, H) are the conv's zero padding
    # (top/bottom border) or the ragged tail of the last block: zero them.
    t_iota = lax.broadcasted_iota(jnp.int32, (1, th, w), 1)
    src_row = r * th + t_iota - 1
    x_src = jnp.where((src_row >= 0) & (src_row < h_in), x_src, 0.0)

    # Left/right conv padding: zero columns 0 and W+1 of the Wp-wide tile.
    zcol = jnp.zeros((cin, th, 1), x_src.dtype)
    x_wp = jnp.concatenate([zcol, x_src, zcol], axis=2)              # (Cin,TH,Wp)

    # hard-sigmoid(conv):  clip(sum_c (w/6)[co,c]*x + (b+3)/6, 0, 1)
    for co in range(cout):
        acc = w_ref[co, 0] * x_wp[0]
        for ci in range(1, cin):
            acc = acc + w_ref[co, ci] * x_wp[ci]
        o_ref[0, co] = jnp.clip(acc + b_ref[co], 0.0, 1.0).astype(o_ref.dtype)


def _forward_fused(x_nchw, w_conv2, b_conv2):
    x_nchw = x_nchw.astype(jnp.float32)
    n, cin, h, w = x_nchw.shape
    cout = w_conv2.shape[0]
    hp, wp = h + 2, w + 2

    th = _choose_tile_rows(hp, w, wp, n, cin, cout)
    r_blocks = -(-hp // th)

    # Halo side-input: the first output row of block r needs input row r*th-1,
    # which lives in the previous block.  Gather those few rows once (tiny).
    prev_rows = np.clip(np.arange(r_blocks) * th - 1, 0, h - 1)
    x_halo = jnp.transpose(x_nchw[:, :, prev_rows, :], (0, 2, 1, 3))  # (N,R,Cin,W)
    x_halo = x_halo[:, :, :, None, :]                                 # (N,R,Cin,1,W)

    # Fold "+3" and "/6" into the (tiny) conv parameters:
    #   clamp(w.x + b + 3, 0, 6)/6 == clip((w/6).x + (b+3)/6, 0, 1)
    w_scaled = w_conv2.reshape(cout, cin).astype(jnp.float32) / 6.0
    b_folded = (b_conv2.astype(jnp.float32) + 3.0) / 6.0

    # Keep the (ragged) last input block starting inside the unpadded input.
    last_in_blk = max((h - 1) // th, 0)

    kernel = functools.partial(_hardsig_conv1x1_fused_kernel, h_in=h)

    return pl.pallas_call(
        kernel,
        out_shape=jax.ShapeDtypeStruct((n, cout, hp, wp), jnp.float32),
        grid=(n, r_blocks),
        in_specs=[
            pl.BlockSpec(memory_space=pltpu.MemorySpace.SMEM),   # weight / 6
            pl.BlockSpec(memory_space=pltpu.MemorySpace.SMEM),   # (bias + 3) / 6
            pl.BlockSpec((1, cin, th, w),
                         lambda nn, rr: (nn, 0, jnp.minimum(rr, last_in_blk), 0)),
            pl.BlockSpec((1, 1, cin, 1, w),
                         lambda nn, rr: (nn, rr, 0, 0, 0)),
        ],
        out_specs=pl.BlockSpec((1, cout, th, wp),
                               lambda nn, rr: (nn, 0, rr, 0)),
        compiler_params=pltpu.CompilerParams(
            dimension_semantics=("parallel", "parallel"),
            vmem_limit_bytes=32 * 1024 * 1024,
        ),
    )(w_scaled, b_folded, x_nchw, x_halo)


# ----------------------------------------------------------------------------
# Fallback kernel (only if the fused halo path fails to lower): XLA-padded
# input, but still tiled row-blocks and no output epilogue copy.
# ----------------------------------------------------------------------------
def _hardsig_conv1x1_prepad_kernel(w_ref, b_ref, x_ref, o_ref):
    x = x_ref[0]                              # (Cin, TH, Wp), pre-padded input
    cin = x.shape[0]
    cout = o_ref.shape[1]
    for co in range(cout):
        acc = w_ref[co, 0] * x[0]
        for ci in range(1, cin):
            acc = acc + w_ref[co, ci] * x[ci]
        o_ref[0, co] = jnp.clip(acc + b_ref[co], 0.0, 1.0).astype(o_ref.dtype)


def _forward_prepadded(x_nchw, w_conv2, b_conv2):
    x_nchw = x_nchw.astype(jnp.float32)
    n, cin, h, w = x_nchw.shape
    cout = w_conv2.shape[0]
    hp, wp = h + 2, w + 2

    x_pad = jnp.pad(x_nchw, ((0, 0), (0, 0), (1, 1), (1, 1)))
    th = _choose_tile_rows(hp, wp, wp, n, cin, cout)
    r_blocks = -(-hp // th)

    w_scaled = w_conv2.reshape(cout, cin).astype(jnp.float32) / 6.0
    b_folded = (b_conv2.astype(jnp.float32) + 3.0) / 6.0

    return pl.pallas_call(
        _hardsig_conv1x1_prepad_kernel,
        out_shape=jax.ShapeDtypeStruct((n, cout, hp, wp), jnp.float32),
        grid=(n, r_blocks),
        in_specs=[
            pl.BlockSpec(memory_space=pltpu.MemorySpace.SMEM),
            pl.BlockSpec(memory_space=pltpu.MemorySpace.SMEM),
            pl.BlockSpec((1, cin, th, wp), lambda nn, rr: (nn, 0, rr, 0)),
        ],
        out_specs=pl.BlockSpec((1, cout, th, wp), lambda nn, rr: (nn, 0, rr, 0)),
        compiler_params=pltpu.CompilerParams(
            dimension_semantics=("parallel", "parallel"),
            vmem_limit_bytes=32 * 1024 * 1024,
        ),
    )(w_scaled, b_folded, x_pad)


def model_forward(x_nchw, w_conv2, b_conv2):
    """x_nchw: (N, 3, H, W) f32; w_conv2: (Cout, 3, 1, 1); b_conv2: (Cout,).
    Returns (N, Cout, H+2, W+2) f32."""
    try:
        return _forward_fused(x_nchw, w_conv2, b_conv2)
    except Exception:  # pragma: no cover - Mosaic w/o unaligned-concat support
        return _forward_prepadded(x_nchw, w_conv2, b_conv2)


def _reference_forward(x_nchw, w_conv2, b_conv2):
    """Pure-JAX reference for correctness check."""
    n, cin, h, w = x_nchw.shape
    cout = w_conv2.shape[0]
    x_pad = jnp.pad(x_nchw, ((0, 0), (0, 0), (1, 1), (1, 1)))
    wm = w_conv2.reshape(cout, cin)
    v2 = jnp.einsum("nchw,oc->nohw", x_pad, wm) + b_conv2[None, :, None, None]
    return jnp.clip(v2 + 3.0, 0.0, 6.0) / 6.0


if __name__ == "__main__":
    # Small shapes consistent with the module: batch=2, channels=3, spatial=16.
    key = jax.random.PRNGKey(0)
    kx, kw, kb = jax.random.split(key, 3)

    N, CIN, H, W = 2, 3, 16, 16
    COUT = 8

    x1 = jax.random.normal(kx, (N, CIN, H, W), dtype=jnp.float32)
    w_conv2 = 0.1 * jax.random.normal(kw, (COUT, CIN, 1, 1), dtype=jnp.float32)
    b_conv2 = 0.1 * jax.random.normal(kb, (COUT,), dtype=jnp.float32)

    out = model_forward(x1, w_conv2, b_conv2)
    out = jax.block_until_ready(out)

    ref = _reference_forward(x1, w_conv2, b_conv2)
    assert out.shape == (N, COUT, H + 2, W + 2), out.shape
    assert jnp.allclose(out, ref, atol=1e-5, rtol=1e-5), "mismatch vs reference"

    print("KERNEL_OK")
</pallas_src>

<mosaic_0001>
module attributes {stable_mosaic.version = 11 : i64} {
  func.func @_hardsig_conv1x1_fused_kernel(%arg0: i32, %arg1: i32, %arg2: memref<8x3xf32, #tpu.memory_space<smem>>, %arg3: memref<8xf32, #tpu.memory_space<smem>>, %arg4: memref<1x3x16x16xf32, #tpu.memory_space<vmem>>, %arg5: memref<1x1x3x1x16xf32, #tpu.memory_space<vmem>>, %arg6: memref<1x8x16x18xf32, #tpu.memory_space<vmem>>) attributes {dimension_semantics = [#tpu.dimension_semantics<parallel>, #tpu.dimension_semantics<parallel>], iteration_bounds = array<i64: 2, 2>, scalar_prefetch = 0 : i64, scratch_operands = 0 : i64, tpu.core_type = #tpu.core_type<tc>, window_params = [{transform_indices = @transform_0, window_bounds = array<i64: 8, 3>}, {transform_indices = @transform_1, window_bounds = array<i64: 8>}, {transform_indices = @transform_2, window_bounds = array<i64: 1, 3, 16, 16>}, {transform_indices = @transform_3, window_bounds = array<i64: 1, 1, 3, 1, 16>}, {transform_indices = @transform_4, window_bounds = array<i64: 1, 8, 16, 18>}]} {
    %c0 = arith.constant 0 : index
    %c0_0 = arith.constant 0 : index
    %c0_1 = arith.constant 0 : index
    %c0_2 = arith.constant 0 : index
    %0 = vector.load %arg4[%c0, %c0_0, %c0_1, %c0_2] : memref<1x3x16x16xf32, #tpu.memory_space<vmem>>, vector<1x3x16x16xf32>
    %1 = vector.shape_cast %0 : vector<1x3x16x16xf32> to vector<3x16x16xf32>
    %c0_3 = arith.constant 0 : index
    %c0_4 = arith.constant 0 : index
    %c0_5 = arith.constant 0 : index
    %c0_6 = arith.constant 0 : index
    %c0_7 = arith.constant 0 : index
    %2 = vector.load %arg5[%c0_3, %c0_4, %c0_5, %c0_6, %c0_7] : memref<1x1x3x1x16xf32, #tpu.memory_space<vmem>>, vector<1x1x3x1x16xf32>
    %3 = vector.shape_cast %2 : vector<1x1x3x1x16xf32> to vector<3x1x16xf32>
    %4 = vector.extract_strided_slice %1 {offsets = [0, 0, 0], sizes = [3, 15, 16], strides = [1, 1, 1]} : vector<3x16x16xf32> to vector<3x15x16xf32>
    %5 = tpu.concatenate %3, %4 in 1 : vector<3x1x16xf32>, vector<3x15x16xf32> -> vector<3x16x16xf32>
    %6 = tpu.iota {dimensions = array<i32: 1>} : vector<1x16x16xi32>
    %c16_i32 = arith.constant 16 : i32
    %7 = arith.muli %arg1, %c16_i32 : i32
    %8 = vector.broadcast %7 : i32 to vector<1x16x16xi32>
    %9 = arith.addi %8, %6 : vector<1x16x16xi32>
    %c1_i32 = arith.constant 1 : i32
    %10 = vector.broadcast %c1_i32 : i32 to vector<1x16x16xi32>
    %11 = arith.subi %9, %10 : vector<1x16x16xi32>
    %c0_i32 = arith.constant 0 : i32
    %12 = vector.broadcast %c0_i32 : i32 to vector<1x16x16xi32>
    %13 = arith.cmpi sge, %11, %12 : vector<1x16x16xi32>
    %c16_i32_8 = arith.constant 16 : i32
    %14 = vector.broadcast %c16_i32_8 : i32 to vector<1x16x16xi32>
    %15 = arith.cmpi slt, %11, %14 : vector<1x16x16xi32>
    %16 = arith.andi %13, %15 : vector<1x16x16xi1>
    %cst = arith.constant 0.000000e+00 : f32
    %17 = vector.shape_cast %16 : vector<1x16x16xi1> to vector<1x16x16xi1>
    %18 = vector.broadcast %17 : vector<1x16x16xi1> to vector<3x16x16xi1>
    %19 = vector.broadcast %cst : f32 to vector<3x16x16xf32>
    %20 = arith.select %18, %5, %19 : vector<3x16x16xi1>, vector<3x16x16xf32>
    %cst_9 = arith.constant 0.000000e+00 : f32
    %21 = vector.broadcast %cst_9 : f32 to vector<3x16x1xf32>
    %22 = tpu.concatenate %21, %20, %21 in 2 : vector<3x16x1xf32>, vector<3x16x16xf32>, vector<3x16x1xf32> -> vector<3x16x18xf32>
    %c0_10 = arith.constant 0 : index
    %c0_11 = arith.constant 0 : index
    %23 = memref.load %arg2[%c0_10, %c0_11] : memref<8x3xf32, #tpu.memory_space<smem>>
    %24 = vector.extract_strided_slice %22 {offsets = [0, 0, 0], sizes = [1, 16, 18], strides = [1, 1, 1]} : vector<3x16x18xf32> to vector<1x16x18xf32>
    %25 = vector.shape_cast %24 : vector<1x16x18xf32> to vector<16x18xf32>
    %26 = vector.broadcast %23 : f32 to vector<16x18xf32>
    %27 = arith.mulf %26, %25 : vector<16x18xf32>
    %c0_12 = arith.constant 0 : index
    %c1 = arith.constant 1 : index
    %28 = memref.load %arg2[%c0_12, %c1] : memref<8x3xf32, #tpu.memory_space<smem>>
    %29 = vector.extract_strided_slice %22 {offsets = [1, 0, 0], sizes = [1, 16, 18], strides = [1, 1, 1]} : vector<3x16x18xf32> to vector<1x16x18xf32>
    %30 = vector.shape_cast %29 : vector<1x16x18xf32> to vector<16x18xf32>
    %31 = vector.broadcast %28 : f32 to vector<16x18xf32>
    %32 = arith.mulf %31, %30 : vector<16x18xf32>
    %33 = arith.addf %27, %32 : vector<16x18xf32>
    %c0_13 = arith.constant 0 : index
    %c2 = arith.constant 2 : index
    %34 = memref.load %arg2[%c0_13, %c2] : memref<8x3xf32, #tpu.memory_space<smem>>
    %35 = vector.extract_strided_slice %22 {offsets = [2, 0, 0], sizes = [1, 16, 18], strides = [1, 1, 1]} : vector<3x16x18xf32> to vector<1x16x18xf32>
    %36 = vector.shape_cast %35 : vector<1x16x18xf32> to vector<16x18xf32>
    %37 = vector.broadcast %34 : f32 to vector<16x18xf32>
    %38 = arith.mulf %37, %36 : vector<16x18xf32>
    %39 = arith.addf %33, %38 : vector<16x18xf32>
    %c0_14 = arith.constant 0 : index
    %40 = memref.load %arg3[%c0_14] : memref<8xf32, #tpu.memory_space<smem>>
    %41 = vector.broadcast %40 : f32 to vector<16x18xf32>
    %42 = arith.addf %39, %41 : vector<16x18xf32>
    %cst_15 = arith.constant 0.000000e+00 : f32
    %cst_16 = arith.constant 1.000000e+00 : f32
    %43 = vector.broadcast %cst_15 : f32 to vector<16x18xf32>
    %44 = arith.maximumf %43, %42 : vector<16x18xf32>
    %45 = vector.broadcast %cst_16 : f32 to vector<16x18xf32>
    %46 = arith.minimumf %45, %44 : vector<16x18xf32>
    %c0_17 = arith.constant 0 : index
    %c0_18 = arith.constant 0 : index
    %c0_19 = arith.constant 0 : index
    %c0_20 = arith.constant 0 : index
    %47 = vector.load %arg6[%c0_17, %c0_18, %c0_19, %c0_20] : memref<1x8x16x18xf32, #tpu.memory_space<vmem>>, vector<1x1x16x18xf32>
    %48 = vector.shape_cast %47 : vector<1x1x16x18xf32> to vector<16x18xf32>
    %49 = vector.shape_cast %46 : vector<16x18xf32> to vector<1x1x16x18xf32>
    tpu.vector_store %arg6[%c0_17, %c0_18, %c0_19, %c0_20], %49 {strides = array<i32>} : memref<1x8x16x18xf32, #tpu.memory_space<vmem>>, vector<1x1x16x18xf32>,
    %c1_21 = arith.constant 1 : index
    %c0_22 = arith.constant 0 : index
    %50 = memref.load %arg2[%c1_21, %c0_22] : memref<8x3xf32, #tpu.memory_space<smem>>
    %51 = vector.extract_strided_slice %22 {offsets = [0, 0, 0], sizes = [1, 16, 18], strides = [1, 1, 1]} : vector<3x16x18xf32> to vector<1x16x18xf32>
    %52 = vector.shape_cast %51 : vector<1x16x18xf32> to vector<16x18xf32>
    %53 = vector.broadcast %50 : f32 to vector<16x18xf32>
    %54 = arith.mulf %53, %52 : vector<16x18xf32>
    %c1_23 = arith.constant 1 : index
    %c1_24 = arith.constant 1 : index
    %55 = memref.load %arg2[%c1_23, %c1_24] : memref<8x3xf32, #tpu.memory_space<smem>>
    %56 = vector.extract_strided_slice %22 {offsets = [1, 0, 0], sizes = [1, 16, 18], strides = [1, 1, 1]} : vector<3x16x18xf32> to vector<1x16x18xf32>
    %57 = vector.shape_cast %56 : vector<1x16x18xf32> to vector<16x18xf32>
    %58 = vector.broadcast %55 : f32 to vector<16x18xf32>
    %59 = arith.mulf %58, %57 : vector<16x18xf32>
    %60 = arith.addf %54, %59 : vector<16x18xf32>
    %c1_25 = arith.constant 1 : index
    %c2_26 = arith.constant 2 : index
    %61 = memref.load %arg2[%c1_25, %c2_26] : memref<8x3xf32, #tpu.memory_space<smem>>
    %62 = vector.extract_strided_slice %22 {offsets = [2, 0, 0], sizes = [1, 16, 18], strides = [1, 1, 1]} : vector<3x16x18xf32> to vector<1x16x18xf32>
    %63 = vector.shape_cast %62 : vector<1x16x18xf32> to vector<16x18xf32>
    %64 = vector.broadcast %61 : f32 to vector<16x18xf32>
    %65 = arith.mulf %64, %63 : vector<16x18xf32>
    %66 = arith.addf %60, %65 : vector<16x18xf32>
    %c1_27 = arith.constant 1 : index
    %67 = memref.load %arg3[%c1_27] : memref<8xf32, #tpu.memory_space<smem>>
    %68 = vector.broadcast %67 : f32 to vector<16x18xf32>
    %69 = arith.addf %66, %68 : vector<16x18xf32>
    %cst_28 = arith.constant 0.000000e+00 : f32
    %cst_29 = arith.constant 1.000000e+00 : f32
    %70 = vector.broadcast %cst_28 : f32 to vector<16x18xf32>
    %71 = arith.maximumf %70, %69 : vector<16x18xf32>
    %72 = vector.broadcast %cst_29 : f32 to vector<16x18xf32>
    %73 = arith.minimumf %72, %71 : vector<16x18xf32>
    %c0_30 = arith.constant 0 : index
    %c1_31 = arith.constant 1 : index
    %c0_32 = arith.constant 0 : index
    %c0_33 = arith.constant 0 : index
    %74 = vector.load %arg6[%c0_30, %c1_31, %c0_32, %c0_33] : memref<1x8x16x18xf32, #tpu.memory_space<vmem>>, vector<1x1x16x18xf32>
    %75 = vector.shape_cast %74 : vector<1x1x16x18xf32> to vector<16x18xf32>
    %76 = vector.shape_cast %73 : vector<16x18xf32> to vector<1x1x16x18xf32>
    tpu.vector_store %arg6[%c0_30, %c1_31, %c0_32, %c0_33], %76 {strides = array<i32>} : memref<1x8x16x18xf32, #tpu.memory_space<vmem>>, vector<1x1x16x18xf32>,
    %c2_34 = arith.constant 2 : index
    %c0_35 = arith.constant 0 : index
    %77 = memref.load %arg2[%c2_34, %c0_35] : memref<8x3xf32, #tpu.memory_space<smem>>
    %78 = vector.extract_strided_slice %22 {offsets = [0, 0, 0], sizes = [1, 16, 18], strides = [1, 1, 1]} : vector<3x16x18xf32> to vector<1x16x18xf32>
    %79 = vector.shape_cast %78 : vector<1x16x18xf32> to vector<16x18xf32>
    %80 = vector.broadcast %77 : f32 to vector<16x18xf32>
    %81 = arith.mulf %80, %79 : vector<16x18xf32>
    %c2_36 = arith.constant 2 : index
    %c1_37 = arith.constant 1 : index
    %82 = memref.load %arg2[%c2_36, %c1_37] : memref<8x3xf32, #tpu.memory_space<smem>>
    %83 = vector.extract_strided_slice %22 {offsets = [1, 0, 0], sizes = [1, 16, 18], strides = [1, 1, 1]} : vector<3x16x18xf32> to vector<1x16x18xf32>
    %84 = vector.shape_cast %83 : vector<1x16x18xf32> to vector<16x18xf32>
    %85 = vector.broadcast %82 : f32 to vector<16x18xf32>
    %86 = arith.mulf %85, %84 : vector<16x18xf32>
    %87 = arith.addf %81, %86 : vector<16x18xf32>
    %c2_38 = arith.constant 2 : index
    %c2_39 = arith.constant 2 : index
    %88 = memref.load %arg2[%c2_38, %c2_39] : memref<8x3xf32, #tpu.memory_space<smem>>
    %89 = vector.extract_strided_slice %22 {offsets = [2, 0, 0], sizes = [1, 16, 18], strides = [1, 1, 1]} : vector<3x16x18xf32> to vector<1x16x18xf32>
    %90 = vector.shape_cast %89 : vector<1x16x18xf32> to vector<16x18xf32>
    %91 = vector.broadcast %88 : f32 to vector<16x18xf32>
    %92 = arith.mulf %91, %90 : vector<16x18xf32>
    %93 = arith.addf %87, %92 : vector<16x18xf32>
    %c2_40 = arith.constant 2 : index
    %94 = memref.load %arg3[%c2_40] : memref<8xf32, #tpu.memory_space<smem>>
    %95 = vector.broadcast %94 : f32 to vector<16x18xf32>
    %96 = arith.addf %93, %95 : vector<16x18xf32>
    %cst_41 = arith.constant 0.000000e+00 : f32
    %cst_42 = arith.constant 1.000000e+00 : f32
    %97 = vector.broadcast %cst_41 : f32 to vector<16x18xf32>
    %98 = arith.maximumf %97, %96 : vector<16x18xf32>
    %99 = vector.broadcast %cst_42 : f32 to vector<16x18xf32>
    %100 = arith.minimumf %99, %98 : vector<16x18xf32>
    %c0_43 = arith.constant 0 : index
    %c2_44 = arith.constant 2 : index
    %c0_45 = arith.constant 0 : index
    %c0_46 = arith.constant 0 : index
    %101 = vector.load %arg6[%c0_43, %c2_44, %c0_45, %c0_46] : memref<1x8x16x18xf32, #tpu.memory_space<vmem>>, vector<1x1x16x18xf32>
    %102 = vector.shape_cast %101 : vector<1x1x16x18xf32> to vector<16x18xf32>
    %103 = vector.shape_cast %100 : vector<16x18xf32> to vector<1x1x16x18xf32>
    tpu.vector_store %arg6[%c0_43, %c2_44, %c0_45, %c0_46], %103 {strides = array<i32>} : memref<1x8x16x18xf32, #tpu.memory_space<vmem>>, vector<1x1x16x18xf32>,
    %c3 = arith.constant 3 : index
    %c0_47 = arith.constant 0 : index
    %104 = memref.load %arg2[%c3, %c0_47] : memref<8x3xf32, #tpu.memory_space<smem>>
    %105 = vector.extract_strided_slice %22 {offsets = [0, 0, 0], sizes = [1, 16, 18], strides = [1, 1, 1]} : vector<3x16x18xf32> to vector<1x16x18xf32>
    %106 = vector.shape_cast %105 : vector<1x16x18xf32> to vector<16x18xf32>
    %107 = vector.broadcast %104 : f32 to vector<16x18xf32>
    %108 = arith.mulf %107, %106 : vector<16x18xf32>
    %c3_48 = arith.constant 3 : index
    %c1_49 = arith.constant 1 : index
    %109 = memref.load %arg2[%c3_48, %c1_49] : memref<8x3xf32, #tpu.memory_space<smem>>
    %110 = vector.extract_strided_slice %22 {offsets = [1, 0, 0], sizes = [1, 16, 18], strides = [1, 1, 1]} : vector<3x16x18xf32> to vector<1x16x18xf32>
    %111 = vector.shape_cast %110 : vector<1x16x18xf32> to vector<16x18xf32>
    %112 = vector.broadcast %109 : f32 to vector<16x18xf32>
    %113 = arith.mulf %112, %111 : vector<16x18xf32>
    %114 = arith.addf %108, %113 : vector<16x18xf32>
    %c3_50 = arith.constant 3 : index
    %c2_51 = arith.constant 2 : index
    %115 = memref.load %arg2[%c3_50, %c2_51] : memref<8x3xf32, #tpu.memory_space<smem>>
    %116 = vector.extract_strided_slice %22 {offsets = [2, 0, 0], sizes = [1, 16, 18], strides = [1, 1, 1]} : vector<3x16x18xf32> to vector<1x16x18xf32>
    %117 = vector.shape_cast %116 : vector<1x16x18xf32> to vector<16x18xf32>
    %118 = vector.broadcast %115 : f32 to vector<16x18xf32>
    %119 = arith.mulf %118, %117 : vector<16x18xf32>
    %120 = arith.addf %114, %119 : vector<16x18xf32>
    %c3_52 = arith.constant 3 : index
    %121 = memref.load %arg3[%c3_52] : memref<8xf32, #tpu.memory_space<smem>>
    %122 = vector.broadcast %121 : f32 to vector<16x18xf32>
    %123 = arith.addf %120, %122 : vector<16x18xf32>
    %cst_53 = arith.constant 0.000000e+00 : f32
    %cst_54 = arith.constant 1.000000e+00 : f32
    %124 = vector.broadcast %cst_53 : f32 to vector<16x18xf32>
    %125 = arith.maximumf %124, %123 : vector<16x18xf32>
    %126 = vector.broadcast %cst_54 : f32 to vector<16x18xf32>
    %127 = arith.minimumf %126, %125 : vector<16x18xf32>
    %c0_55 = arith.constant 0 : index
    %c3_56 = arith.constant 3 : index
    %c0_57 = arith.constant 0 : index
    %c0_58 = arith.constant 0 : index
    %128 = vector.load %arg6[%c0_55, %c3_56, %c0_57, %c0_58] : memref<1x8x16x18xf32, #tpu.memory_space<vmem>>, vector<1x1x16x18xf32>
    %129 = vector.shape_cast %128 : vector<1x1x16x18xf32> to vector<16x18xf32>
    %130 = vector.shape_cast %127 : vector<16x18xf32> to vector<1x1x16x18xf32>
    tpu.vector_store %arg6[%c0_55, %c3_56, %c0_57, %c0_58], %130 {strides = array<i32>} : memref<1x8x16x18xf32, #tpu.memory_space<vmem>>, vector<1x1x16x18xf32>,
    %c4 = arith.constant 4 : index
    %c0_59 = arith.constant 0 : index
    %131 = memref.load %arg2[%c4, %c0_59] : memref<8x3xf32, #tpu.memory_space<smem>>
    %132 = vector.extract_strided_slice %22 {offsets = [0, 0, 0], sizes = [1, 16, 18], strides = [1, 1, 1]} : vector<3x16x18xf32> to vector<1x16x18xf32>
    %133 = vector.shape_cast %132 : vector<1x16x18xf32> to vector<16x18xf32>
    %134 = vector.broadcast %131 : f32 to vector<16x18xf32>
    %135 = arith.mulf %134, %133 : vector<16x18xf32>
    %c4_60 = arith.constant 4 : index
    %c1_61 = arith.constant 1 : index
    %136 = memref.load %arg2[%c4_60, %c1_61] : memref<8x3xf32, #tpu.memory_space<smem>>
    %137 = vector.extract_strided_slice %22 {offsets = [1, 0, 0], sizes = [1, 16, 18], strides = [1, 1, 1]} : vector<3x16x18xf32> to vector<1x16x18xf32>
    %138 = vector.shape_cast %137 : vector<1x16x18xf32> to vector<16x18xf32>
    %139 = vector.broadcast %136 : f32 to vector<16x18xf32>
    %140 = arith.mulf %139, %138 : vector<16x18xf32>
    %141 = arith.addf %135, %140 : vector<16x18xf32>
    %c4_62 = arith.constant 4 : index
    %c2_63 = arith.constant 2 : index
    %142 = memref.load %arg2[%c4_62, %c2_63] : memref<8x3xf32, #tpu.memory_space<smem>>
    %143 = vector.extract_strided_slice %22 {offsets = [2, 0, 0], sizes = [1, 16, 18], strides = [1, 1, 1]} : vector<3x16x18xf32> to vector<1x16x18xf32>
    %144 = vector.shape_cast %143 : vector<1x16x18xf32> to vector<16x18xf32>
    %145 = vector.broadcast %142 : f32 to vector<16x18xf32>
    %146 = arith.mulf %145, %144 : vector<16x18xf32>
    %147 = arith.addf %141, %146 : vector<16x18xf32>
    %c4_64 = arith.constant 4 : index
    %148 = memref.load %arg3[%c4_64] : memref<8xf32, #tpu.memory_space<smem>>
    %149 = vector.broadcast %148 : f32 to vector<16x18xf32>
    %150 = arith.addf %147, %149 : vector<16x18xf32>
    %cst_65 = arith.constant 0.000000e+00 : f32
    %cst_66 = arith.constant 1.000000e+00 : f32
    %151 = vector.broadcast %cst_65 : f32 to vector<16x18xf32>
    %152 = arith.maximumf %151, %150 : vector<16x18xf32>
    %153 = vector.broadcast %cst_66 : f32 to vector<16x18xf32>
    %154 = arith.minimumf %153, %152 : vector<16x18xf32>
    %c0_67 = arith.constant 0 : index
    %c4_68 = arith.constant 4 : index
    %c0_69 = arith.constant 0 : index
    %c0_70 = arith.constant 0 : index
    %155 = vector.load %arg6[%c0_67, %c4_68, %c0_69, %c0_70] : memref<1x8x16x18xf32, #tpu.memory_space<vmem>>, vector<1x1x16x18xf32>
    %156 = vector.shape_cast %155 : vector<1x1x16x18xf32> to vector<16x18xf32>
    %157 = vector.shape_cast %154 : vector<16x18xf32> to vector<1x1x16x18xf32>
    tpu.vector_store %arg6[%c0_67, %c4_68, %c0_69, %c0_70], %157 {strides = array<i32>} : memref<1x8x16x18xf32, #tpu.memory_space<vmem>>, vector<1x1x16x18xf32>,
    %c5 = arith.constant 5 : index
    %c0_71 = arith.constant 0 : index
    %158 = memref.load %arg2[%c5, %c0_71] : memref<8x3xf32, #tpu.memory_space<smem>>
    %159 = vector.extract_strided_slice %22 {offsets = [0, 0, 0], sizes = [1, 16, 18], strides = [1, 1, 1]} : vector<3x16x18xf32> to vector<1x16x18xf32>
    %160 = vector.shape_cast %159 : vector<1x16x18xf32> to vector<16x18xf32>
    %161 = vector.broadcast %158 : f32 to vector<16x18xf32>
    %162 = arith.mulf %161, %160 : vector<16x18xf32>
    %c5_72 = arith.constant 5 : index
    %c1_73 = arith.constant 1 : index
    %163 = memref.load %arg2[%c5_72, %c1_73] : memref<8x3xf32, #tpu.memory_space<smem>>
    %164 = vector.extract_strided_slice %22 {offsets = [1, 0, 0], sizes = [1, 16, 18], strides = [1, 1, 1]} : vector<3x16x18xf32> to vector<1x16x18xf32>
    %165 = vector.shape_cast %164 : vector<1x16x18xf32> to vector<16x18xf32>
    %166 = vector.broadcast %163 : f32 to vector<16x18xf32>
    %167 = arith.mulf %166, %165 : vector<16x18xf32>
    %168 = arith.addf %162, %167 : vector<16x18xf32>
    %c5_74 = arith.constant 5 : index
    %c2_75 = arith.constant 2 : index
    %169 = memref.load %arg2[%c5_74, %c2_75] : memref<8x3xf32, #tpu.memory_space<smem>>
    %170 = vector.extract_strided_slice %22 {offsets = [2, 0, 0], sizes = [1, 16, 18], strides = [1, 1, 1]} : vector<3x16x18xf32> to vector<1x16x18xf32>
    %171 = vector.shape_cast %170 : vector<1x16x18xf32> to vector<16x18xf32>
    %172 = vector.broadcast %169 : f32 to vector<16x18xf32>
    %173 = arith.mulf %172, %171 : vector<16x18xf32>
    %174 = arith.addf %168, %173 : vector<16x18xf32>
    %c5_76 = arith.constant 5 : index
    %175 = memref.load %arg3[%c5_76] : memref<8xf32, #tpu.memory_space<smem>>
    %176 = vector.broadcast %175 : f32 to vector<16x18xf32>
    %177 = arith.addf %174, %176 : vector<16x18xf32>
    %cst_77 = arith.constant 0.000000e+00 : f32
    %cst_78 = arith.constant 1.000000e+00 : f32
    %178 = vector.broadcast %cst_77 : f32 to vector<16x18xf32>
    %179 = arith.maximumf %178, %177 : vector<16x18xf32>
    %180 = vector.broadcast %cst_78 : f32 to vector<16x18xf32>
    %181 = arith.minimumf %180, %179 : vector<16x18xf32>
    %c0_79 = arith.constant 0 : index
    %c5_80 = arith.constant 5 : index
    %c0_81 = arith.constant 0 : index
    %c0_82 = arith.constant 0 : index
    %182 = vector.load %arg6[%c0_79, %c5_80, %c0_81, %c0_82] : memref<1x8x16x18xf32, #tpu.memory_space<vmem>>, vector<1x1x16x18xf32>
    %183 = vector.shape_cast %182 : vector<1x1x16x18xf32> to vector<16x18xf32>
    %184 = vector.shape_cast %181 : vector<16x18xf32> to vector<1x1x16x18xf32>
    tpu.vector_store %arg6[%c0_79, %c5_80, %c0_81, %c0_82], %184 {strides = array<i32>} : memref<1x8x16x18xf32, #tpu.memory_space<vmem>>, vector<1x1x16x18xf32>,
    %c6 = arith.constant 6 : index
    %c0_83 = arith.constant 0 : index
    %185 = memref.load %arg2[%c6, %c0_83] : memref<8x3xf32, #tpu.memory_space<smem>>
    %186 = vector.extract_strided_slice %22 {offsets = [0, 0, 0], sizes = [1, 16, 18], strides = [1, 1, 1]} : vector<3x16x18xf32> to vector<1x16x18xf32>
    %187 = vector.shape_cast %186 : vector<1x16x18xf32> to vector<16x18xf32>
    %188 = vector.broadcast %185 : f32 to vector<16x18xf32>
    %189 = arith.mulf %188, %187 : vector<16x18xf32>
    %c6_84 = arith.constant 6 : index
    %c1_85 = arith.constant 1 : index
    %190 = memref.load %arg2[%c6_84, %c1_85] : memref<8x3xf32, #tpu.memory_space<smem>>
    %191 = vector.extract_strided_slice %22 {offsets = [1, 0, 0], sizes = [1, 16, 18], strides = [1, 1, 1]} : vector<3x16x18xf32> to vector<1x16x18xf32>
    %192 = vector.shape_cast %191 : vector<1x16x18xf32> to vector<16x18xf32>
    %193 = vector.broadcast %190 : f32 to vector<16x18xf32>
    %194 = arith.mulf %193, %192 : vector<16x18xf32>
    %195 = arith.addf %189, %194 : vector<16x18xf32>
    %c6_86 = arith.constant 6 : index
    %c2_87 = arith.constant 2 : index
    %196 = memref.load %arg2[%c6_86, %c2_87] : memref<8x3xf32, #tpu.memory_space<smem>>
    %197 = vector.extract_strided_slice %22 {offsets = [2, 0, 0], sizes = [1, 16, 18], strides = [1, 1, 1]} : vector<3x16x18xf32> to vector<1x16x18xf32>
    %198 = vector.shape_cast %197 : vector<1x16x18xf32> to vector<16x18xf32>
    %199 = vector.broadcast %196 : f32 to vector<16x18xf32>
    %200 = arith.mulf %199, %198 : vector<16x18xf32>
    %201 = arith.addf %195, %200 : vector<16x18xf32>
    %c6_88 = arith.constant 6 : index
    %202 = memref.load %arg3[%c6_88] : memref<8xf32, #tpu.memory_space<smem>>
    %203 = vector.broadcast %202 : f32 to vector<16x18xf32>
    %204 = arith.addf %201, %203 : vector<16x18xf32>
    %cst_89 = arith.constant 0.000000e+00 : f32
    %cst_90 = arith.constant 1.000000e+00 : f32
    %205 = vector.broadcast %cst_89 : f32 to vector<16x18xf32>
    %206 = arith.maximumf %205, %204 : vector<16x18xf32>
    %207 = vector.broadcast %cst_90 : f32 to vector<16x18xf32>
    %208 = arith.minimumf %207, %206 : vector<16x18xf32>
    %c0_91 = arith.constant 0 : index
    %c6_92 = arith.constant 6 : index
    %c0_93 = arith.constant 0 : index
    %c0_94 = arith.constant 0 : index
    %209 = vector.load %arg6[%c0_91, %c6_92, %c0_93, %c0_94] : memref<1x8x16x18xf32, #tpu.memory_space<vmem>>, vector<1x1x16x18xf32>
    %210 = vector.shape_cast %209 : vector<1x1x16x18xf32> to vector<16x18xf32>
    %211 = vector.shape_cast %208 : vector<16x18xf32> to vector<1x1x16x18xf32>
    tpu.vector_store %arg6[%c0_91, %c6_92, %c0_93, %c0_94], %211 {strides = array<i32>} : memref<1x8x16x18xf32, #tpu.memory_space<vmem>>, vector<1x1x16x18xf32>,
    %c7 = arith.constant 7 : index
    %c0_95 = arith.constant 0 : index
    %212 = memref.load %arg2[%c7, %c0_95] : memref<8x3xf32, #tpu.memory_space<smem>>
    %213 = vector.extract_strided_slice %22 {offsets = [0, 0, 0], sizes = [1, 16, 18], strides = [1, 1, 1]} : vector<3x16x18xf32> to vector<1x16x18xf32>
    %214 = vector.shape_cast %213 : vector<1x16x18xf32> to vector<16x18xf32>
    %215 = vector.broadcast %212 : f32 to vector<16x18xf32>
    %216 = arith.mulf %215, %214 : vector<16x18xf32>
    %c7_96 = arith.constant 7 : index
    %c1_97 = arith.constant 1 : index
    %217 = memref.load %arg2[%c7_96, %c1_97] : memref<8x3xf32, #tpu.memory_space<smem>>
    %218 = vector.extract_strided_slice %22 {offsets = [1, 0, 0], sizes = [1, 16, 18], strides = [1, 1, 1]} : vector<3x16x18xf32> to vector<1x16x18xf32>
    %219 = vector.shape_cast %218 : vector<1x16x18xf32> to vector<16x18xf32>
    %220 = vector.broadcast %217 : f32 to vector<16x18xf32>
    %221 = arith.mulf %220, %219 : vector<16x18xf32>
    %222 = arith.addf %216, %221 : vector<16x18xf32>
    %c7_98 = arith.constant 7 : index
    %c2_99 = arith.constant 2 : index
    %223 = memref.load %arg2[%c7_98, %c2_99] : memref<8x3xf32, #tpu.memory_space<smem>>
    %224 = vector.extract_strided_slice %22 {offsets = [2, 0, 0], sizes = [1, 16, 18], strides = [1, 1, 1]} : vector<3x16x18xf32> to vector<1x16x18xf32>
    %225 = vector.shape_cast %224 : vector<1x16x18xf32> to vector<16x18xf32>
    %226 = vector.broadcast %223 : f32 to vector<16x18xf32>
    %227 = arith.mulf %226, %225 : vector<16x18xf32>
    %228 = arith.addf %222, %227 : vector<16x18xf32>
    %c7_100 = arith.constant 7 : index
    %229 = memref.load %arg3[%c7_100] : memref<8xf32, #tpu.memory_space<smem>>
    %230 = vector.broadcast %229 : f32 to vector<16x18xf32>
    %231 = arith.addf %228, %230 : vector<16x18xf32>
    %cst_101 = arith.constant 0.000000e+00 : f32
    %cst_102 = arith.constant 1.000000e+00 : f32
    %232 = vector.broadcast %cst_101 : f32 to vector<16x18xf32>
    %233 = arith.maximumf %232, %231 : vector<16x18xf32>
    %234 = vector.broadcast %cst_102 : f32 to vector<16x18xf32>
    %235 = arith.minimumf %234, %233 : vector<16x18xf32>
    %c0_103 = arith.constant 0 : index
    %c7_104 = arith.constant 7 : index
    %c0_105 = arith.constant 0 : index
    %c0_106 = arith.constant 0 : index
    %236 = vector.load %arg6[%c0_103, %c7_104, %c0_105, %c0_106] : memref<1x8x16x18xf32, #tpu.memory_space<vmem>>, vector<1x1x16x18xf32>
    %237 = vector.shape_cast %236 : vector<1x1x16x18xf32> to vector<16x18xf32>
    %238 = vector.shape_cast %235 : vector<16x18xf32> to vector<1x1x16x18xf32>
    tpu.vector_store %arg6[%c0_103, %c7_104, %c0_105, %c0_106], %238 {strides = array<i32>} : memref<1x8x16x18xf32, #tpu.memory_space<vmem>>, vector<1x1x16x18xf32>,
    return
  }
  func.func @transform_0(%arg0: i32, %arg1: i32) -> (i32, i32) {
    %c0_i32 = arith.constant 0 : i32
    %c0_i32_0 = arith.constant 0 : i32
    %c0_i32_1 = arith.constant 0 : i32
    return %c0_i32, %c0_i32_0 : i32, i32
  }
  func.func @transform_1(%arg0: i32, %arg1: i32) -> i32 {
    %c0_i32 = arith.constant 0 : i32
    %c0_i32_0 = arith.constant 0 : i32
    return %c0_i32 : i32
  }
  func.func @transform_2(%arg0: i32, %arg1: i32) -> (i32, i32, i32, i32) {
    %c0_i32 = arith.constant 0 : i32
    %0 = arith.minsi %arg1, %c0_i32 : i32
    %c0_i32_0 = arith.constant 0 : i32
    %c0_i32_1 = arith.constant 0 : i32
    %c0_i32_2 = arith.constant 0 : i32
    return %arg0, %c0_i32_0, %0, %c0_i32_1 : i32, i32, i32, i32
  }
  func.func @transform_3(%arg0: i32, %arg1: i32) -> (i32, i32, i32, i32, i32) {
    %c0_i32 = arith.constant 0 : i32
    %c0_i32_0 = arith.constant 0 : i32
    %c0_i32_1 = arith.constant 0 : i32
    %c0_i32_2 = arith.constant 0 : i32
    return %arg0, %arg1, %c0_i32, %c0_i32_0, %c0_i32_1 : i32, i32, i32, i32, i32
  }
  func.func @transform_4(%arg0: i32, %arg1: i32) -> (i32, i32, i32, i32) {
    %c0_i32 = arith.constant 0 : i32
    %c0_i32_0 = arith.constant 0 : i32
    %c0_i32_1 = arith.constant 0 : i32
    return %arg0, %c0_i32, %arg1, %c0_i32_0 : i32, i32, i32, i32
  }
}

module attributes {stable_mosaic.version = 11 : i64} {
  func.func @_hardsig_conv1x1_prepad_kernel(%arg0: i32, %arg1: i32, %arg2: memref<8x3xf32, #tpu.memory_space<smem>>, %arg3: memref<8xf32, #tpu.memory_space<smem>>, %arg4: memref<1x3x16x18xf32, #tpu.memory_space<vmem>>, %arg5: memref<1x8x16x18xf32, #tpu.memory_space<vmem>>) attributes {dimension_semantics = [#tpu.dimension_semantics<parallel>, #tpu.dimension_semantics<parallel>], iteration_bounds = array<i64: 2, 2>, scalar_prefetch = 0 : i64, scratch_operands = 0 : i64, tpu.core_type = #tpu.core_type<tc>, window_params = [{transform_indices = @transform_0, window_bounds = array<i64: 8, 3>}, {transform_indices = @transform_1, window_bounds = array<i64: 8>}, {transform_indices = @transform_2, window_bounds = array<i64: 1, 3, 16, 18>}, {transform_indices = @transform_3, window_bounds = array<i64: 1, 8, 16, 18>}]} {
    %c0 = arith.constant 0 : index
    %c0_0 = arith.constant 0 : index
    %c0_1 = arith.constant 0 : index
    %c0_2 = arith.constant 0 : index
    %0 = vector.load %arg4[%c0, %c0_0, %c0_1, %c0_2] : memref<1x3x16x18xf32, #tpu.memory_space<vmem>>, vector<1x3x16x18xf32>
    %1 = vector.shape_cast %0 : vector<1x3x16x18xf32> to vector<3x16x18xf32>
    %c0_3 = arith.constant 0 : index
    %c0_4 = arith.constant 0 : index
    %2 = memref.load %arg2[%c0_3, %c0_4] : memref<8x3xf32, #tpu.memory_space<smem>>
    %3 = vector.extract_strided_slice %1 {offsets = [0, 0, 0], sizes = [1, 16, 18], strides = [1, 1, 1]} : vector<3x16x18xf32> to vector<1x16x18xf32>
    %4 = vector.shape_cast %3 : vector<1x16x18xf32> to vector<16x18xf32>
    %5 = vector.broadcast %2 : f32 to vector<16x18xf32>
    %6 = arith.mulf %5, %4 : vector<16x18xf32>
    %c0_5 = arith.constant 0 : index
    %c1 = arith.constant 1 : index
    %7 = memref.load %arg2[%c0_5, %c1] : memref<8x3xf32, #tpu.memory_space<smem>>
    %8 = vector.extract_strided_slice %1 {offsets = [1, 0, 0], sizes = [1, 16, 18], strides = [1, 1, 1]} : vector<3x16x18xf32> to vector<1x16x18xf32>
    %9 = vector.shape_cast %8 : vector<1x16x18xf32> to vector<16x18xf32>
    %10 = vector.broadcast %7 : f32 to vector<16x18xf32>
    %11 = arith.mulf %10, %9 : vector<16x18xf32>
    %12 = arith.addf %6, %11 : vector<16x18xf32>
    %c0_6 = arith.constant 0 : index
    %c2 = arith.constant 2 : index
    %13 = memref.load %arg2[%c0_6, %c2] : memref<8x3xf32, #tpu.memory_space<smem>>
    %14 = vector.extract_strided_slice %1 {offsets = [2, 0, 0], sizes = [1, 16, 18], strides = [1, 1, 1]} : vector<3x16x18xf32> to vector<1x16x18xf32>
    %15 = vector.shape_cast %14 : vector<1x16x18xf32> to vector<16x18xf32>
    %16 = vector.broadcast %13 : f32 to vector<16x18xf32>
    %17 = arith.mulf %16, %15 : vector<16x18xf32>
    %18 = arith.addf %12, %17 : vector<16x18xf32>
    %c0_7 = arith.constant 0 : index
    %19 = memref.load %arg3[%c0_7] : memref<8xf32, #tpu.memory_space<smem>>
    %20 = vector.broadcast %19 : f32 to vector<16x18xf32>
    %21 = arith.addf %18, %20 : vector<16x18xf32>
    %cst = arith.constant 0.000000e+00 : f32
    %cst_8 = arith.constant 1.000000e+00 : f32
    %22 = vector.broadcast %cst : f32 to vector<16x18xf32>
    %23 = arith.maximumf %22, %21 : vector<16x18xf32>
    %24 = vector.broadcast %cst_8 : f32 to vector<16x18xf32>
    %25 = arith.minimumf %24, %23 : vector<16x18xf32>
    %c0_9 = arith.constant 0 : index
    %c0_10 = arith.constant 0 : index
    %c0_11 = arith.constant 0 : index
    %c0_12 = arith.constant 0 : index
    %26 = vector.load %arg5[%c0_9, %c0_10, %c0_11, %c0_12] : memref<1x8x16x18xf32, #tpu.memory_space<vmem>>, vector<1x1x16x18xf32>
    %27 = vector.shape_cast %26 : vector<1x1x16x18xf32> to vector<16x18xf32>
    %28 = vector.shape_cast %25 : vector<16x18xf32> to vector<1x1x16x18xf32>
    tpu.vector_store %arg5[%c0_9, %c0_10, %c0_11, %c0_12], %28 {strides = array<i32>} : memref<1x8x16x18xf32, #tpu.memory_space<vmem>>, vector<1x1x16x18xf32>,
    %c1_13 = arith.constant 1 : index
    %c0_14 = arith.constant 0 : index
    %29 = memref.load %arg2[%c1_13, %c0_14] : memref<8x3xf32, #tpu.memory_space<smem>>
    %30 = vector.extract_strided_slice %1 {offsets = [0, 0, 0], sizes = [1, 16, 18], strides = [1, 1, 1]} : vector<3x16x18xf32> to vector<1x16x18xf32>
    %31 = vector.shape_cast %30 : vector<1x16x18xf32> to vector<16x18xf32>
    %32 = vector.broadcast %29 : f32 to vector<16x18xf32>
    %33 = arith.mulf %32, %31 : vector<16x18xf32>
    %c1_15 = arith.constant 1 : index
    %c1_16 = arith.constant 1 : index
    %34 = memref.load %arg2[%c1_15, %c1_16] : memref<8x3xf32, #tpu.memory_space<smem>>
    %35 = vector.extract_strided_slice %1 {offsets = [1, 0, 0], sizes = [1, 16, 18], strides = [1, 1, 1]} : vector<3x16x18xf32> to vector<1x16x18xf32>
    %36 = vector.shape_cast %35 : vector<1x16x18xf32> to vector<16x18xf32>
    %37 = vector.broadcast %34 : f32 to vector<16x18xf32>
    %38 = arith.mulf %37, %36 : vector<16x18xf32>
    %39 = arith.addf %33, %38 : vector<16x18xf32>
    %c1_17 = arith.constant 1 : index
    %c2_18 = arith.constant 2 : index
    %40 = memref.load %arg2[%c1_17, %c2_18] : memref<8x3xf32, #tpu.memory_space<smem>>
    %41 = vector.extract_strided_slice %1 {offsets = [2, 0, 0], sizes = [1, 16, 18], strides = [1, 1, 1]} : vector<3x16x18xf32> to vector<1x16x18xf32>
    %42 = vector.shape_cast %41 : vector<1x16x18xf32> to vector<16x18xf32>
    %43 = vector.broadcast %40 : f32 to vector<16x18xf32>
    %44 = arith.mulf %43, %42 : vector<16x18xf32>
    %45 = arith.addf %39, %44 : vector<16x18xf32>
    %c1_19 = arith.constant 1 : index
    %46 = memref.load %arg3[%c1_19] : memref<8xf32, #tpu.memory_space<smem>>
    %47 = vector.broadcast %46 : f32 to vector<16x18xf32>
    %48 = arith.addf %45, %47 : vector<16x18xf32>
    %cst_20 = arith.constant 0.000000e+00 : f32
    %cst_21 = arith.constant 1.000000e+00 : f32
    %49 = vector.broadcast %cst_20 : f32 to vector<16x18xf32>
    %50 = arith.maximumf %49, %48 : vector<16x18xf32>
    %51 = vector.broadcast %cst_21 : f32 to vector<16x18xf32>
    %52 = arith.minimumf %51, %50 : vector<16x18xf32>
    %c0_22 = arith.constant 0 : index
    %c1_23 = arith.constant 1 : index
    %c0_24 = arith.constant 0 : index
    %c0_25 = arith.constant 0 : index
    %53 = vector.load %arg5[%c0_22, %c1_23, %c0_24, %c0_25] : memref<1x8x16x18xf32, #tpu.memory_space<vmem>>, vector<1x1x16x18xf32>
    %54 = vector.shape_cast %53 : vector<1x1x16x18xf32> to vector<16x18xf32>
    %55 = vector.shape_cast %52 : vector<16x18xf32> to vector<1x1x16x18xf32>
    tpu.vector_store %arg5[%c0_22, %c1_23, %c0_24, %c0_25], %55 {strides = array<i32>} : memref<1x8x16x18xf32, #tpu.memory_space<vmem>>, vector<1x1x16x18xf32>,
    %c2_26 = arith.constant 2 : index
    %c0_27 = arith.constant 0 : index
    %56 = memref.load %arg2[%c2_26, %c0_27] : memref<8x3xf32, #tpu.memory_space<smem>>
    %57 = vector.extract_strided_slice %1 {offsets = [0, 0, 0], sizes = [1, 16, 18], strides = [1, 1, 1]} : vector<3x16x18xf32> to vector<1x16x18xf32>
    %58 = vector.shape_cast %57 : vector<1x16x18xf32> to vector<16x18xf32>
    %59 = vector.broadcast %56 : f32 to vector<16x18xf32>
    %60 = arith.mulf %59, %58 : vector<16x18xf32>
    %c2_28 = arith.constant 2 : index
    %c1_29 = arith.constant 1 : index
    %61 = memref.load %arg2[%c2_28, %c1_29] : memref<8x3xf32, #tpu.memory_space<smem>>
    %62 = vector.extract_strided_slice %1 {offsets = [1, 0, 0], sizes = [1, 16, 18], strides = [1, 1, 1]} : vector<3x16x18xf32> to vector<1x16x18xf32>
    %63 = vector.shape_cast %62 : vector<1x16x18xf32> to vector<16x18xf32>
    %64 = vector.broadcast %61 : f32 to vector<16x18xf32>
    %65 = arith.mulf %64, %63 : vector<16x18xf32>
    %66 = arith.addf %60, %65 : vector<16x18xf32>
    %c2_30 = arith.constant 2 : index
    %c2_31 = arith.constant 2 : index
    %67 = memref.load %arg2[%c2_30, %c2_31] : memref<8x3xf32, #tpu.memory_space<smem>>
    %68 = vector.extract_strided_slice %1 {offsets = [2, 0, 0], sizes = [1, 16, 18], strides = [1, 1, 1]} : vector<3x16x18xf32> to vector<1x16x18xf32>
    %69 = vector.shape_cast %68 : vector<1x16x18xf32> to vector<16x18xf32>
    %70 = vector.broadcast %67 : f32 to vector<16x18xf32>
    %71 = arith.mulf %70, %69 : vector<16x18xf32>
    %72 = arith.addf %66, %71 : vector<16x18xf32>
    %c2_32 = arith.constant 2 : index
    %73 = memref.load %arg3[%c2_32] : memref<8xf32, #tpu.memory_space<smem>>
    %74 = vector.broadcast %73 : f32 to vector<16x18xf32>
    %75 = arith.addf %72, %74 : vector<16x18xf32>
    %cst_33 = arith.constant 0.000000e+00 : f32
    %cst_34 = arith.constant 1.000000e+00 : f32
    %76 = vector.broadcast %cst_33 : f32 to vector<16x18xf32>
    %77 = arith.maximumf %76, %75 : vector<16x18xf32>
    %78 = vector.broadcast %cst_34 : f32 to vector<16x18xf32>
    %79 = arith.minimumf %78, %77 : vector<16x18xf32>
    %c0_35 = arith.constant 0 : index
    %c2_36 = arith.constant 2 : index
    %c0_37 = arith.constant 0 : index
    %c0_38 = arith.constant 0 : index
    %80 = vector.load %arg5[%c0_35, %c2_36, %c0_37, %c0_38] : memref<1x8x16x18xf32, #tpu.memory_space<vmem>>, vector<1x1x16x18xf32>
    %81 = vector.shape_cast %80 : vector<1x1x16x18xf32> to vector<16x18xf32>
    %82 = vector.shape_cast %79 : vector<16x18xf32> to vector<1x1x16x18xf32>
    tpu.vector_store %arg5[%c0_35, %c2_36, %c0_37, %c0_38], %82 {strides = array<i32>} : memref<1x8x16x18xf32, #tpu.memory_space<vmem>>, vector<1x1x16x18xf32>,
    %c3 = arith.constant 3 : index
    %c0_39 = arith.constant 0 : index
    %83 = memref.load %arg2[%c3, %c0_39] : memref<8x3xf32, #tpu.memory_space<smem>>
    %84 = vector.extract_strided_slice %1 {offsets = [0, 0, 0], sizes = [1, 16, 18], strides = [1, 1, 1]} : vector<3x16x18xf32> to vector<1x16x18xf32>
    %85 = vector.shape_cast %84 : vector<1x16x18xf32> to vector<16x18xf32>
    %86 = vector.broadcast %83 : f32 to vector<16x18xf32>
    %87 = arith.mulf %86, %85 : vector<16x18xf32>
    %c3_40 = arith.constant 3 : index
    %c1_41 = arith.constant 1 : index
    %88 = memref.load %arg2[%c3_40, %c1_41] : memref<8x3xf32, #tpu.memory_space<smem>>
    %89 = vector.extract_strided_slice %1 {offsets = [1, 0, 0], sizes = [1, 16, 18], strides = [1, 1, 1]} : vector<3x16x18xf32> to vector<1x16x18xf32>
    %90 = vector.shape_cast %89 : vector<1x16x18xf32> to vector<16x18xf32>
    %91 = vector.broadcast %88 : f32 to vector<16x18xf32>
    %92 = arith.mulf %91, %90 : vector<16x18xf32>
    %93 = arith.addf %87, %92 : vector<16x18xf32>
    %c3_42 = arith.constant 3 : index
    %c2_43 = arith.constant 2 : index
    %94 = memref.load %arg2[%c3_42, %c2_43] : memref<8x3xf32, #tpu.memory_space<smem>>
    %95 = vector.extract_strided_slice %1 {offsets = [2, 0, 0], sizes = [1, 16, 18], strides = [1, 1, 1]} : vector<3x16x18xf32> to vector<1x16x18xf32>
    %96 = vector.shape_cast %95 : vector<1x16x18xf32> to vector<16x18xf32>
    %97 = vector.broadcast %94 : f32 to vector<16x18xf32>
    %98 = arith.mulf %97, %96 : vector<16x18xf32>
    %99 = arith.addf %93, %98 : vector<16x18xf32>
    %c3_44 = arith.constant 3 : index
    %100 = memref.load %arg3[%c3_44] : memref<8xf32, #tpu.memory_space<smem>>
    %101 = vector.broadcast %100 : f32 to vector<16x18xf32>
    %102 = arith.addf %99, %101 : vector<16x18xf32>
    %cst_45 = arith.constant 0.000000e+00 : f32
    %cst_46 = arith.constant 1.000000e+00 : f32
    %103 = vector.broadcast %cst_45 : f32 to vector<16x18xf32>
    %104 = arith.maximumf %103, %102 : vector<16x18xf32>
    %105 = vector.broadcast %cst_46 : f32 to vector<16x18xf32>
    %106 = arith.minimumf %105, %104 : vector<16x18xf32>
    %c0_47 = arith.constant 0 : index
    %c3_48 = arith.constant 3 : index
    %c0_49 = arith.constant 0 : index
    %c0_50 = arith.constant 0 : index
    %107 = vector.load %arg5[%c0_47, %c3_48, %c0_49, %c0_50] : memref<1x8x16x18xf32, #tpu.memory_space<vmem>>, vector<1x1x16x18xf32>
    %108 = vector.shape_cast %107 : vector<1x1x16x18xf32> to vector<16x18xf32>
    %109 = vector.shape_cast %106 : vector<16x18xf32> to vector<1x1x16x18xf32>
    tpu.vector_store %arg5[%c0_47, %c3_48, %c0_49, %c0_50], %109 {strides = array<i32>} : memref<1x8x16x18xf32, #tpu.memory_space<vmem>>, vector<1x1x16x18xf32>,
    %c4 = arith.constant 4 : index
    %c0_51 = arith.constant 0 : index
    %110 = memref.load %arg2[%c4, %c0_51] : memref<8x3xf32, #tpu.memory_space<smem>>
    %111 = vector.extract_strided_slice %1 {offsets = [0, 0, 0], sizes = [1, 16, 18], strides = [1, 1, 1]} : vector<3x16x18xf32> to vector<1x16x18xf32>
    %112 = vector.shape_cast %111 : vector<1x16x18xf32> to vector<16x18xf32>
    %113 = vector.broadcast %110 : f32 to vector<16x18xf32>
    %114 = arith.mulf %113, %112 : vector<16x18xf32>
    %c4_52 = arith.constant 4 : index
    %c1_53 = arith.constant 1 : index
    %115 = memref.load %arg2[%c4_52, %c1_53] : memref<8x3xf32, #tpu.memory_space<smem>>
    %116 = vector.extract_strided_slice %1 {offsets = [1, 0, 0], sizes = [1, 16, 18], strides = [1, 1, 1]} : vector<3x16x18xf32> to vector<1x16x18xf32>
    %117 = vector.shape_cast %116 : vector<1x16x18xf32> to vector<16x18xf32>
    %118 = vector.broadcast %115 : f32 to vector<16x18xf32>
    %119 = arith.mulf %118, %117 : vector<16x18xf32>
    %120 = arith.addf %114, %119 : vector<16x18xf32>
    %c4_54 = arith.constant 4 : index
    %c2_55 = arith.constant 2 : index
    %121 = memref.load %arg2[%c4_54, %c2_55] : memref<8x3xf32, #tpu.memory_space<smem>>
    %122 = vector.extract_strided_slice %1 {offsets = [2, 0, 0], sizes = [1, 16, 18], strides = [1, 1, 1]} : vector<3x16x18xf32> to vector<1x16x18xf32>
    %123 = vector.shape_cast %122 : vector<1x16x18xf32> to vector<16x18xf32>
    %124 = vector.broadcast %121 : f32 to vector<16x18xf32>
    %125 = arith.mulf %124, %123 : vector<16x18xf32>
    %126 = arith.addf %120, %125 : vector<16x18xf32>
    %c4_56 = arith.constant 4 : index
    %127 = memref.load %arg3[%c4_56] : memref<8xf32, #tpu.memory_space<smem>>
    %128 = vector.broadcast %127 : f32 to vector<16x18xf32>
    %129 = arith.addf %126, %128 : vector<16x18xf32>
    %cst_57 = arith.constant 0.000000e+00 : f32
    %cst_58 = arith.constant 1.000000e+00 : f32
    %130 = vector.broadcast %cst_57 : f32 to vector<16x18xf32>
    %131 = arith.maximumf %130, %129 : vector<16x18xf32>
    %132 = vector.broadcast %cst_58 : f32 to vector<16x18xf32>
    %133 = arith.minimumf %132, %131 : vector<16x18xf32>
    %c0_59 = arith.constant 0 : index
    %c4_60 = arith.constant 4 : index
    %c0_61 = arith.constant 0 : index
    %c0_62 = arith.constant 0 : index
    %134 = vector.load %arg5[%c0_59, %c4_60, %c0_61, %c0_62] : memref<1x8x16x18xf32, #tpu.memory_space<vmem>>, vector<1x1x16x18xf32>
    %135 = vector.shape_cast %134 : vector<1x1x16x18xf32> to vector<16x18xf32>
    %136 = vector.shape_cast %133 : vector<16x18xf32> to vector<1x1x16x18xf32>
    tpu.vector_store %arg5[%c0_59, %c4_60, %c0_61, %c0_62], %136 {strides = array<i32>} : memref<1x8x16x18xf32, #tpu.memory_space<vmem>>, vector<1x1x16x18xf32>,
    %c5 = arith.constant 5 : index
    %c0_63 = arith.constant 0 : index
    %137 = memref.load %arg2[%c5, %c0_63] : memref<8x3xf32, #tpu.memory_space<smem>>
    %138 = vector.extract_strided_slice %1 {offsets = [0, 0, 0], sizes = [1, 16, 18], strides = [1, 1, 1]} : vector<3x16x18xf32> to vector<1x16x18xf32>
    %139 = vector.shape_cast %138 : vector<1x16x18xf32> to vector<16x18xf32>
    %140 = vector.broadcast %137 : f32 to vector<16x18xf32>
    %141 = arith.mulf %140, %139 : vector<16x18xf32>
    %c5_64 = arith.constant 5 : index
    %c1_65 = arith.constant 1 : index
    %142 = memref.load %arg2[%c5_64, %c1_65] : memref<8x3xf32, #tpu.memory_space<smem>>
    %143 = vector.extract_strided_slice %1 {offsets = [1, 0, 0], sizes = [1, 16, 18], strides = [1, 1, 1]} : vector<3x16x18xf32> to vector<1x16x18xf32>
    %144 = vector.shape_cast %143 : vector<1x16x18xf32> to vector<16x18xf32>
    %145 = vector.broadcast %142 : f32 to vector<16x18xf32>
    %146 = arith.mulf %145, %144 : vector<16x18xf32>
    %147 = arith.addf %141, %146 : vector<16x18xf32>
    %c5_66 = arith.constant 5 : index
    %c2_67 = arith.constant 2 : index
    %148 = memref.load %arg2[%c5_66, %c2_67] : memref<8x3xf32, #tpu.memory_space<smem>>
    %149 = vector.extract_strided_slice %1 {offsets = [2, 0, 0], sizes = [1, 16, 18], strides = [1, 1, 1]} : vector<3x16x18xf32> to vector<1x16x18xf32>
    %150 = vector.shape_cast %149 : vector<1x16x18xf32> to vector<16x18xf32>
    %151 = vector.broadcast %148 : f32 to vector<16x18xf32>
    %152 = arith.mulf %151, %150 : vector<16x18xf32>
    %153 = arith.addf %147, %152 : vector<16x18xf32>
    %c5_68 = arith.constant 5 : index
    %154 = memref.load %arg3[%c5_68] : memref<8xf32, #tpu.memory_space<smem>>
    %155 = vector.broadcast %154 : f32 to vector<16x18xf32>
    %156 = arith.addf %153, %155 : vector<16x18xf32>
    %cst_69 = arith.constant 0.000000e+00 : f32
    %cst_70 = arith.constant 1.000000e+00 : f32
    %157 = vector.broadcast %cst_69 : f32 to vector<16x18xf32>
    %158 = arith.maximumf %157, %156 : vector<16x18xf32>
    %159 = vector.broadcast %cst_70 : f32 to vector<16x18xf32>
    %160 = arith.minimumf %159, %158 : vector<16x18xf32>
    %c0_71 = arith.constant 0 : index
    %c5_72 = arith.constant 5 : index
    %c0_73 = arith.constant 0 : index
    %c0_74 = arith.constant 0 : index
    %161 = vector.load %arg5[%c0_71, %c5_72, %c0_73, %c0_74] : memref<1x8x16x18xf32, #tpu.memory_space<vmem>>, vector<1x1x16x18xf32>
    %162 = vector.shape_cast %161 : vector<1x1x16x18xf32> to vector<16x18xf32>
    %163 = vector.shape_cast %160 : vector<16x18xf32> to vector<1x1x16x18xf32>
    tpu.vector_store %arg5[%c0_71, %c5_72, %c0_73, %c0_74], %163 {strides = array<i32>} : memref<1x8x16x18xf32, #tpu.memory_space<vmem>>, vector<1x1x16x18xf32>,
    %c6 = arith.constant 6 : index
    %c0_75 = arith.constant 0 : index
    %164 = memref.load %arg2[%c6, %c0_75] : memref<8x3xf32, #tpu.memory_space<smem>>
    %165 = vector.extract_strided_slice %1 {offsets = [0, 0, 0], sizes = [1, 16, 18], strides = [1, 1, 1]} : vector<3x16x18xf32> to vector<1x16x18xf32>
    %166 = vector.shape_cast %165 : vector<1x16x18xf32> to vector<16x18xf32>
    %167 = vector.broadcast %164 : f32 to vector<16x18xf32>
    %168 = arith.mulf %167, %166 : vector<16x18xf32>
    %c6_76 = arith.constant 6 : index
    %c1_77 = arith.constant 1 : index
    %169 = memref.load %arg2[%c6_76, %c1_77] : memref<8x3xf32, #tpu.memory_space<smem>>
    %170 = vector.extract_strided_slice %1 {offsets = [1, 0, 0], sizes = [1, 16, 18], strides = [1, 1, 1]} : vector<3x16x18xf32> to vector<1x16x18xf32>
    %171 = vector.shape_cast %170 : vector<1x16x18xf32> to vector<16x18xf32>
    %172 = vector.broadcast %169 : f32 to vector<16x18xf32>
    %173 = arith.mulf %172, %171 : vector<16x18xf32>
    %174 = arith.addf %168, %173 : vector<16x18xf32>
    %c6_78 = arith.constant 6 : index
    %c2_79 = arith.constant 2 : index
    %175 = memref.load %arg2[%c6_78, %c2_79] : memref<8x3xf32, #tpu.memory_space<smem>>
    %176 = vector.extract_strided_slice %1 {offsets = [2, 0, 0], sizes = [1, 16, 18], strides = [1, 1, 1]} : vector<3x16x18xf32> to vector<1x16x18xf32>
    %177 = vector.shape_cast %176 : vector<1x16x18xf32> to vector<16x18xf32>
    %178 = vector.broadcast %175 : f32 to vector<16x18xf32>
    %179 = arith.mulf %178, %177 : vector<16x18xf32>
    %180 = arith.addf %174, %179 : vector<16x18xf32>
    %c6_80 = arith.constant 6 : index
    %181 = memref.load %arg3[%c6_80] : memref<8xf32, #tpu.memory_space<smem>>
    %182 = vector.broadcast %181 : f32 to vector<16x18xf32>
    %183 = arith.addf %180, %182 : vector<16x18xf32>
    %cst_81 = arith.constant 0.000000e+00 : f32
    %cst_82 = arith.constant 1.000000e+00 : f32
    %184 = vector.broadcast %cst_81 : f32 to vector<16x18xf32>
    %185 = arith.maximumf %184, %183 : vector<16x18xf32>
    %186 = vector.broadcast %cst_82 : f32 to vector<16x18xf32>
    %187 = arith.minimumf %186, %185 : vector<16x18xf32>
    %c0_83 = arith.constant 0 : index
    %c6_84 = arith.constant 6 : index
    %c0_85 = arith.constant 0 : index
    %c0_86 = arith.constant 0 : index
    %188 = vector.load %arg5[%c0_83, %c6_84, %c0_85, %c0_86] : memref<1x8x16x18xf32, #tpu.memory_space<vmem>>, vector<1x1x16x18xf32>
    %189 = vector.shape_cast %188 : vector<1x1x16x18xf32> to vector<16x18xf32>
    %190 = vector.shape_cast %187 : vector<16x18xf32> to vector<1x1x16x18xf32>
    tpu.vector_store %arg5[%c0_83, %c6_84, %c0_85, %c0_86], %190 {strides = array<i32>} : memref<1x8x16x18xf32, #tpu.memory_space<vmem>>, vector<1x1x16x18xf32>,
    %c7 = arith.constant 7 : index
    %c0_87 = arith.constant 0 : index
    %191 = memref.load %arg2[%c7, %c0_87] : memref<8x3xf32, #tpu.memory_space<smem>>
    %192 = vector.extract_strided_slice %1 {offsets = [0, 0, 0], sizes = [1, 16, 18], strides = [1, 1, 1]} : vector<3x16x18xf32> to vector<1x16x18xf32>
    %193 = vector.shape_cast %192 : vector<1x16x18xf32> to vector<16x18xf32>
    %194 = vector.broadcast %191 : f32 to vector<16x18xf32>
    %195 = arith.mulf %194, %193 : vector<16x18xf32>
    %c7_88 = arith.constant 7 : index
    %c1_89 = arith.constant 1 : index
    %196 = memref.load %arg2[%c7_88, %c1_89] : memref<8x3xf32, #tpu.memory_space<smem>>
    %197 = vector.extract_strided_slice %1 {offsets = [1, 0, 0], sizes = [1, 16, 18], strides = [1, 1, 1]} : vector<3x16x18xf32> to vector<1x16x18xf32>
    %198 = vector.shape_cast %197 : vector<1x16x18xf32> to vector<16x18xf32>
    %199 = vector.broadcast %196 : f32 to vector<16x18xf32>
    %200 = arith.mulf %199, %198 : vector<16x18xf32>
    %201 = arith.addf %195, %200 : vector<16x18xf32>
    %c7_90 = arith.constant 7 : index
    %c2_91 = arith.constant 2 : index
    %202 = memref.load %arg2[%c7_90, %c2_91] : memref<8x3xf32, #tpu.memory_space<smem>>
    %203 = vector.extract_strided_slice %1 {offsets = [2, 0, 0], sizes = [1, 16, 18], strides = [1, 1, 1]} : vector<3x16x18xf32> to vector<1x16x18xf32>
    %204 = vector.shape_cast %203 : vector<1x16x18xf32> to vector<16x18xf32>
    %205 = vector.broadcast %202 : f32 to vector<16x18xf32>
    %206 = arith.mulf %205, %204 : vector<16x18xf32>
    %207 = arith.addf %201, %206 : vector<16x18xf32>
    %c7_92 = arith.constant 7 : index
    %208 = memref.load %arg3[%c7_92] : memref<8xf32, #tpu.memory_space<smem>>
    %209 = vector.broadcast %208 : f32 to vector<16x18xf32>
    %210 = arith.addf %207, %209 : vector<16x18xf32>
    %cst_93 = arith.constant 0.000000e+00 : f32
    %cst_94 = arith.constant 1.000000e+00 : f32
    %211 = vector.broadcast %cst_93 : f32 to vector<16x18xf32>
    %212 = arith.maximumf %211, %210 : vector<16x18xf32>
    %213 = vector.broadcast %cst_94 : f32 to vector<16x18xf32>
    %214 = arith.minimumf %213, %212 : vector<16x18xf32>
    %c0_95 = arith.constant 0 : index
    %c7_96 = arith.constant 7 : index
    %c0_97 = arith.constant 0 : index
    %c0_98 = arith.constant 0 : index
    %215 = vector.load %arg5[%c0_95, %c7_96, %c0_97, %c0_98] : memref<1x8x16x18xf32, #tpu.memory_space<vmem>>, vector<1x1x16x18xf32>
    %216 = vector.shape_cast %215 : vector<1x1x16x18xf32> to vector<16x18xf32>
    %217 = vector.shape_cast %214 : vector<16x18xf32> to vector<1x1x16x18xf32>
    tpu.vector_store %arg5[%c0_95, %c7_96, %c0_97, %c0_98], %217 {strides = array<i32>} : memref<1x8x16x18xf32, #tpu.memory_space<vmem>>, vector<1x1x16x18xf32>,
    return
  }
  func.func @transform_0(%arg0: i32, %arg1: i32) -> (i32, i32) {
    %c0_i32 = arith.constant 0 : i32
    %c0_i32_0 = arith.constant 0 : i32
    %c0_i32_1 = arith.constant 0 : i32
    return %c0_i32, %c0_i32_0 : i32, i32
  }
  func.func @transform_1(%arg0: i32, %arg1: i32) -> i32 {
    %c0_i32 = arith.constant 0 : i32
    %c0_i32_0 = arith.constant 0 : i32
    return %c0_i32 : i32
  }
  func.func @transform_2(%arg0: i32, %arg1: i32) -> (i32, i32, i32, i32) {
    %c0_i32 = arith.constant 0 : i32
    %c0_i32_0 = arith.constant 0 : i32
    %c0_i32_1 = arith.constant 0 : i32
    return %arg0, %c0_i32, %arg1, %c0_i32_0 : i32, i32, i32, i32
  }
  func.func @transform_3(%arg0: i32, %arg1: i32) -> (i32, i32, i32, i32) {
    %c0_i32 = arith.constant 0 : i32
    %c0_i32_0 = arith.constant 0 : i32
    %c0_i32_1 = arith.constant 0 : i32
    return %arg0, %c0_i32, %arg1, %c0_i32_0 : i32, i32, i32, i32
  }
}

</mosaic_0001>

<bundles_post_ra>
// kernel: tpu_custom_call.1
= control target key start
LH: loop header
LB: loop body
LE: loop exit
PB: predicated region body
PF: predicated region fallthrough
CT: control target
= control target key end

     0   :  { %s2153_s0 = inlined_call_operand.vmem [shape: f32[8,3], index: 0, kind: input, shape index: {}]   ;;  %s2154_s1 = inlined_call_operand.vmem [shape: f32[8], index: 1, kind: input, shape index: {}]   ;;  %s2155_s2 = inlined_call_operand.hbm [shape: f32[2,3,16,16], index: 2, kind: input, shape index: {}]   ;;  %s2156_s3 = inlined_call_operand.vmem [shape: f32[2,2,3,1,16], index: 3, kind: input, shape index: {}]   ;;  %s2157_s4 = inlined_call_operand.vmem [shape: f32[2,8,18,18], index: 4, kind: output, shape index: {}]  }
   0x1   :  { %2180 = sst [smem:[#allocation29_spill]] %s2153_s0 }
   0x2   :  { %2181 = sst [smem:[#allocation30_spill]] %s2154_s1 }
   0x3   :  { %2182 = sst [smem:[#allocation31_spill]] %s2155_s2 }
   0x4   :  { %2183 = sst [smem:[#allocation32_spill]] %s2156_s3 }
   0x5   :  { %2184 = sst [smem:[#allocation33_spill]] %s2157_s4 }
   0x6   :  { %9 = vsyncpa [#allocation4], 0 }
   0x7   :  { %10 = vsyncpa [#allocation6], 0 }
   0x8   :  { %11 = vsyncpa [#allocation3], 0 }
   0x9   :  { %13 = vsyncpa [#allocation3 + $0x1], 0  ;;  %s1495_s15 = smov 0   ;;  %s1497_s16 = smov 0  }
   0xa   :  { %s1499_s17 = smov 0   ;;  %s1501_s18 = smov 0  }
   0xb   :  { %s1503_s19 = smov 0   ;;  %s1505_s20 = smov 0  }
   0xc   :  { %s1507_s21 = smov 0   ;;  %s1509_s22 = smov 0  }
   0xd   :  { %s1511_s23 = smov 0   ;;  %s1513_s24 = smov 0  }
   0xe LB: > { %2185 = sst [smem:[#allocation12_spill]] %s1394_s15  ;;  %s988_s25 = sadd.s32 4294967295, %s1430_s24   ;;  %s1430_s24 = sphi %s1513_s24, %s19_s24   ;;  %s1426_s23 = sphi %s1511_s23, %s2244_s23   ;;  %s1422_s22 = sphi %s1509_s22, %s2243_s22   ;;  %s1418_s21 = sphi %s1507_s21, %s2242_s21   ;;  %s1414_s20 = sphi %s1505_s20, %s2241_s20   ;;  %s1410_s19 = sphi %s1503_s19, %s2240_s19   ;;  %s1406_s18 = sphi %s1501_s18, %s2239_s18   ;;  %s1402_s17 = sphi %s1499_s17, %s2238_s17   ;;  %s1398_s16 = sphi %s1497_s16, %s2237_s16   ;;  %s1394_s15 = sphi %s1495_s15, %s2236_s15  }
   0xf   : > { %2186 = sst [smem:[#allocation13_spill]] %s1398_s16  ;;  %s86_s26 = sadd.s32 1, %s1410_s19 }
  0x10   : > { %2187 = sst [smem:[#allocation14_spill]] %s1406_s18  ;;  %p93_p0 = scmp.ne.s32.totalorder %s1410_s19, %s1406_s18 }
  0x11   : > { %2188 = sst [smem:[#allocation15_spill]] %s1410_s19  ;;  %p94_p1 = scmp.eq.s32.totalorder %s1430_s24, 0 }
  0x12   : > { %2189 = sst [smem:[#allocation16_spill]] %s1414_s20  ;;  %p99_p2 = scmp.ne.s32.totalorder %s1406_s18, %s1402_s17 }
  0x13   : > { %2190 = sst [smem:[#allocation17_spill]] %s1418_s21  ;;  %p1549_p3 = scmp.eq.s32.totalorder %s988_s25, 0 }
  0x14   : > { %2191 = sst [smem:[#allocation18_spill]] %s1422_s22  ;;  %p1553_p4 = por %p94_p1, %p93_p0 }
  0x15   : > { %2192 = sst [smem:[#allocation19_spill]] %s1426_s23  ;;  %s142_s29 = sadd.s32 1, %s1398_s16 }
  0x16   : > { %2193 = sst [smem:[#allocation20_spill]] %s1430_s24  ;;  %p1560_p5 = por %p1549_p3, %p99_p2 }
  0x17   : > { %s2194_s27 = scalar_select %p1549_p3, 1, 0 }
  0x18   : > { %s2196_s30 = scalar_select %p1560_p5, 1, 0 }
  0x19   : > { %p152_p6 = scmp.ne.s32.totalorder %s1398_s16, %s1394_s15  ;;  %p153_p7 = scmp.eq.s32.totalorder %s988_s25, 3 }
  0x1a   : > { %p990_p8 = scmp.ge.s32.totalorder %s1430_s24, 1  ;;  %p166_p9 = scmp.lt.s32.totalorder %s1430_s24, 5 }
  0x1b   : > { %p1568_p10 = por %p153_p7, %p152_p6  ;;  %s2199_s0 = sld [smem:[#allocation29_spill]] }
  0x1c   : > { %p1575_p11 = pnand %p990_p8, %p166_p9  ;;  %p1095_p13 = scmp.lt.s32.totalorder %s1430_s24, 4 }
  0x1d   : > { %s2197_s5 = scalar_select %p1568_p10, 1, 0 }
  0x1e   : > { %s2200_s9 = scalar_select %p1575_p11, 1, 0 }
  0x1f   : > { %2198 = sst [smem:[#allocation21_spill]] %s2197_s5  ;;  %p1082_p12 = pneg %p1575_p11 }
  0x20   : > { %s2201_s1 = sld [smem:[#allocation30_spill]]  ;;  %p1593_p1 = pnand %p1095_p13, %p1553_p4 }
  0x21   : > { %s179_s8 = sshll.u32 %s2199_s0, 4  ;;  %p1587_p0 = pnand %p1082_p12, %p1549_p3  ;;  %s180_s8 = int_to_ptr.vmem [resolvable:$true] %s179_s8 }
  0x22   : > { %s2203_s14 = scalar_select %p1593_p1, 1, 0 }
  0x23   : > { %s1247_s17 = scalar_lea.vmem %s180_s8, 128  ;;  %p1249_p6 = pneg %p1587_p0 }
  0x24   : > { %p1248_p2 = scmp.ne.s32.totalorder %s180_s8, %s1247_s17  ;;  %p1255_p9 = scmp.lt.s32.totalorder %s180_s8, %s180_s8 }
  0x25   : > { %p1256_p10 = scmp.lt.s32.totalorder %s1247_s17, %s1247_s17 }
  0x26   : > { %s190_s12 = sshll.u32 %s2201_s1, 4  ;;  %p1250_p7 = pnand %p1249_p6, %p1248_p2  ;;  %s191_s12 = int_to_ptr.vmem [resolvable:$true] %s190_s12 }
  0x27   : > { %p1257_p5 = por %p1256_p10, %p1255_p9 }
  0x28   : > { %p1251_p8 = pneg %p1250_p7 }
  0x2a   : > { %p1258_p12 = pnand %p1257_p5, %p1251_p8 }
  0x2c   : > { %1261 = shalt.err (!%p1258_p12)
}
  0x2d   : > { %s1464_s25 = smov [#allocation2]   ;;  %s1262_s28 = scalar_lea.vmem %s191_s12, 16 }
  0x2e   : > { %1085 = dma.vmem_to_smem (!%p1587_p0), %s180_s8, 128, %s1464_s25, [#allocation4]  }
  0x2f   : > { %p1263_p4 = scmp.ne.s32.totalorder %s191_s12, %s1262_s28  ;;  %p1270_p11 = scmp.lt.s32.totalorder %s191_s12, %s191_s12 }
  0x30   : > { %p1271_p1 = scmp.lt.s32.totalorder %s1262_s28, %s1262_s28 }
  0x31   : > { %p1265_p13 = pnand %p1263_p4, %p1249_p6 }
  0x32   : > { %p1272_p2 = por %p1271_p1, %p1270_p11 }
  0x33   : > { %p1266_p3 = pneg %p1265_p13 }
  0x35   : > { %p1273_p7 = pnand %p1272_p2, %p1266_p3 }
  0x37   : > { %1276 = shalt.err (!%p1273_p7)
}
  0x38   : > { %s1465_s6 = smov [#allocation5]   ;;  %s28_s7 = sadd.s32 1, %s1422_s22 }
  0x39   : > { %1088 = dma.vmem_to_smem (!%p1587_p0), %s191_s12, 16, %s1465_s6, [#allocation6]  }
  0x3a   : > { %p29_p5 = scmp.ge.s32.totalorder %s28_s7, 2  ;;  %s31_s8 = sadd.s32 1, %s1426_s23 }
  0x3b   : > { %s201_s10 = sand.u32 1, %s1410_s19   ;;  %s1391_s1 = smul.u32 768, %s1426_s23 }
  0x3c   : > { %s2246_s7 = smov (%p29_p5, %s28_s7), 0  ;;  %s2248_s8 = smov (!%p29_p5, %s31_s8), %s1426_s23 }
  0x3d   : > { %2204 = sst [smem:[#allocation22_spill]] %s2246_s7  ;;  %p33_p3 = scmp.ge.s32.totalorder %s2248_s8, 2 }
  0x3e   : > { %s138_s11 = ssub.s32 %s1422_s22, %s2246_s7  ;;  %s1066_s12 = smul.u32 48, %s201_s10 }
  0x3f   : > { %s2250_s8 = smov (%p33_p3, %s2248_s8), 0  ;;  %s2208_s2 = sld [smem:[#allocation31_spill]] }
  0x40   : > { %2205 = sst [smem:[#allocation23_spill]] %s2250_s8  ;;  %s81_s13 = ssub.s32 %s1426_s23, %s2250_s8 }
  0x41   : > { %s139_s17 = sor.u32 %s138_s11, %s81_s13  ;;  %p84_p11 = scmp.eq.s32.totalorder %s81_s13, 0 }
  0x42   : > { %p140_p10 = scmp.eq.s32.totalorder %s139_s17, 0  ;;  %s205_s6 = scalar_lea.vmem [#allocation7], %s1066_s12 }
  0x43   : > { %s1623_s28 = scalar_select %p84_p11, %s1410_s19, %s86_s26  }
  0x44   : > { %s1618_s25 = scalar_select %p140_p10, %s1398_s16, %s142_s29  }
  0x45   : > { %2207 = sst [smem:[#allocation25_spill]] %s1623_s28  ;;  %s216_s0 = sshll.u32 %s205_s6, 4  ;;  %s1625_s0 = int_to_ptr.vmem [resolvable:$true] %s216_s0 }
  0x46   : > { %2206 = sst [smem:[#allocation24_spill]] %s1618_s25  ;;  %s1631_s8 = scalar_lea.hbm %s2208_s2, %s1391_s1 }
  0x47   : > { %s1633_s11 = scalar_lea.sflag [#allocation3], %s201_s10  ;;  %s1277_s29 = scalar_lea.hbm %s1631_s8, 768 }
  0x48   : > { %p1278_p0 = scmp.ne.s32.totalorder %s1631_s8, %s1277_s29  ;;  %p2209_p1 = scmp.ne.s32.totalorder %s2203_s14, 0 }
  0x49   : > { %s1282_s22 = scalar_lea.hbm %s2208_s2, 1536  ;;  %p1283_p12 = scmp.lt.u32.totalorder %s1631_s8, %s2208_s2 }
  0x4a   : > { %p1279_p6 = pneg %p2209_p1  ;;  %p1284_p4 = scmp.lt.u32.totalorder %s1282_s22, %s1277_s29 }
  0x4b   : > { %p1286_p2 = scmp.lt.u32.totalorder %s1277_s29, %s1631_s8 }
  0x4c   : > { %p1280_p8 = pnand %p1279_p6, %p1278_p0  ;;  %p1285_p13 = por %p1284_p4, %p1283_p12 }
  0x4e   : > { %p1281_p9 = pneg %p1280_p8  ;;  %p1287_p7 = por %p1286_p2, %p1285_p13 }
  0x50   : > { %p1288_p5 = pnand %p1287_p7, %p1281_p9 }
  0x52   : > { %1291 = shalt.err (!%p1288_p5)
}
  0x53   : > { %s1292_s10 = scalar_lea.vmem %s1625_s0, 768  ;;  %s1466_s12 = smov [#allocation7]  }
  0x54   : > { %p1293_p3 = scmp.ne.s32.totalorder %s1625_s0, %s1292_s10  ;;  %s1297_s17 = sshll.u32 %s1466_s12, 4  ;;  %s1298_s17 = int_to_ptr.vmem [resolvable:$false] %s1297_s17 }
  0x55   : > { %s1299_s6 = scalar_lea.vmem %s1298_s17, 1536  ;;  %p1300_p0 = scmp.lt.s32.totalorder %s1625_s0, %s1298_s17 }
  0x56   : > { %p1295_p10 = pnand %p1293_p3, %p1279_p6  ;;  %p1301_p8 = scmp.lt.s32.totalorder %s1299_s6, %s1292_s10 }
  0x58   : > { %p1296_p11 = pneg %p1295_p10  ;;  %p1302_p12 = por %p1301_p8, %p1300_p0 }
  0x5a   : > { %p1303_p4 = pnand %p1302_p12, %p1296_p11 }
  0x5c   : > { %1306 = shalt.err (!%p1303_p4)
}
  0x5d   : > { %s1467_s29 = smov 128   ;;  %s1468_s26 = smov 8  }
  0x5e   : > { %1092 = dma.hbm_to_vmem [thread:$0]  (!%p2209_p1), %s1631_s8, 768, %s1625_s0, %s1633_s11, %s1467_s29, %s1467_s29, %s1468_s26  }
  0x5f   : > { %p2210_p6 = scmp.ne.s32.totalorder %s2200_s9, 0 }
  0x61   : > { %239 = sbr.rel (%p2210_p6) target bundleno = 335 (0x14f), region = 36 }
  0x68   : > { %p2211_p9 = scmp.ne.s32.totalorder %s2194_s27, 0 }
  0x6a   : > { %1380 = dma.done.wait (%p2211_p9), [#allocation4], 128  }
  0x6b   : > { %1382 = vsyncadd (%p2211_p9), [#allocation4], 4294967168 }
  0x6c   : > { %1384 = dma.done.wait (%p2211_p9), [#allocation6], 16  }
  0x6d   : > { %1386 = vsyncadd (%p2211_p9), [#allocation6], 4294967280  ;;  %s249_s13 = sand.u32 1, %s1406_s18   ;;  %p2212_p1 = scmp.ne.s32.totalorder %s2196_s30, 0 }
  0x6e   : > { %s1068_s14 = smul.u32 48, %s249_s13  ;;  %s250_s0 = scalar_lea.sflag [#allocation3], %s249_s13 }
  0x70   : > { %s253_s8 = scalar_lea.vmem [#allocation7], %s1068_s14 }
  0x71   : > { %1388 = dma.done.wait (%p2212_p1), %s250_s0, 768  }
  0x72   : > { %1390 = vsyncadd (%p2212_p1), %s250_s0, 4294966528 }
  0x73   : > { %258 = sfence }
  0x74   : > { %p289_p13 = scmp.lt.s32.totalorder %s1418_s21, 1  ;;  %p291_p2 = scmp.lt.s32.totalorder %s1414_s20, 1  ;;  %v336_v0 = vlaneseq  ;;  %v305_v3 = vld [vmem:[%s253_s8 + $0x18] sm:$0xff]  ;;  %v303_v4 = vld [vmem:[%s253_s8 + $0x8] sm:$0xff]  ;;  %v304_v5 = vld [vmem:[%s253_s8 + $0x10] sm:$0xff]  ;;  %vm317_vm0 = vcmask 1040384  }
  0x75   : > { %s1000_s27 = sshll.u32 %s1414_s20, 4  ;;  %v302_v6 = vld [vmem:[%s253_s8] sm:$0xff]  ;;  %v322_v9 = vrot.slane %v305_v3, 7  ;;  %v319_v10 = vrot.slane %v303_v4, 7  ;;  %v321_v11 = vrot.slane %v304_v5, 7  ;;  %v307_v16 = vld [vmem:[%s253_s8 + $0x28] sm:$0xff] }
  0x76   : > { %s290_s9 = scalar_select %p289_p13, %s1418_s21, 1  ;;  %v337_v1 = vshrl.u32 %v336_v0, 7  ;;  %v340_v2 = vstv %s1000_s27  ;;  %v318_v13 = vrot.slane %v302_v6, 7  ;;  %v306_v15 = vld [vmem:[%s253_s8 + $0x20] sm:$0xff]  ;;  %v325_v24 = vrot.slane %v307_v16, 7 }
  0x77   : > { %s292_s11 = scalar_select %p291_p2, %s1414_s20, 1  ;;  %v323_v21 = vsel %vm317_vm0, %v321_v11, %v322_v9  ;;  %v324_v23 = vrot.slane %v306_v15, 7  ;;  %vm385_vm7 = vcmask 7168   ;;  %vm392_vm8 = vcmask 138240  }
  0x78   : > { %s1070_s30 = smul.u32 6, %s290_s9  ;;  %v341_v7 = vadd.s32 %v340_v2, %v337_v1  ;;  %v338_v8 = vadd.s32 8, %v337_v1  ;;  %s2213_s3 = sld [smem:[#allocation32_spill]]  ;;  %v320_v22 = vsel %vm317_vm0, %v318_v13, %v319_v10  ;;  %vm423_vm9 = vcmask 146432  }
  0x79   : > { %s1069_s22 = smul.u32 3, %s292_s11  ;;  %s1469_s17 = smov 1   ;;  %v326_v32 = vsel %vm317_vm0, %v324_v23, %v325_v24 }
  0x7a   : > { %v1001_v12 = vadd.s32 4294967295, %v341_v7  ;;  %v342_v14 = vadd.s32 %v340_v2, %v338_v8  ;;  %s1700_s6 = sld [smem:[#allocation2 + $0x1]]  ;;  %s1716_s9 = sld [smem:[#allocation2]] }
  0x7b   : > { %s295_s1 = sadd.s32 %s1070_s30, %s1069_s22  ;;  %s1702_s29 = sld [smem:[#allocation2 + $0x81]] }
  0x7c   : > { %vm345_vm1 = vcmp.ge.s32.totalorder %v1001_v12, 0  ;;  %vm347_vm2 = vcmp.lt.s32.totalorder %v1001_v12, 16  ;;  %v1002_v17 = vadd.s32 4294967295, %v342_v14  ;;  %s1704_s26 = sld [smem:[#allocation2 + $0x101]]  ;;  %s1718_s11 = sld [smem:[#allocation2 + $0x80]] }
  0x7d   : > { %vm1684_vm3 = vmand %vm345_vm1, %vm347_vm2  ;;  %s1706_s13 = sld [smem:[#allocation2 + $0x181]]  ;;  %s1720_s30 = sld [smem:[#allocation2 + $0x100]] }
  0x7e   : > { %s296_s12 = scalar_lea.vmem %s2213_s3, %s295_s1  ;;  %vm346_vm4 = vcmp.ge.s32.totalorder %v1002_v17, 0  ;;  %vm348_vm5 = vcmp.lt.s32.totalorder %v1002_v17, 16  ;;  %s1708_s14 = sld [smem:[#allocation2 + $0x201]] }
  0x7f   : > { %v309_v18 = vld [vmem:[%s296_s12 + $0x1] sm:$0x1]  ;;  %v308_v20 = vld [vmem:[%s296_s12] sm:$0x1]  ;;  %vm350_vm6 = vmand %vm346_vm4, %vm348_vm5  ;;  %s1710_s0 = sld [smem:[#allocation2 + $0x281]]  ;;  %s1722_s22 = sld [smem:[#allocation2 + $0x180]] }
  0x80   : > { %v334_v25 = vsel %vm317_vm0, %v309_v18, %v321_v11  ;;  %v333_v26 = vsel %vm317_vm0, %v308_v20, %v318_v13  ;;  %v310_v29 = vld [vmem:[%s296_s12 + $0x2] sm:$0x1]  ;;  %v358_v30 = vsel %vm350_vm6, %v323_v21, 0.0  ;;  %v356_v31 = vsel %vm350_vm6, %v320_v22, 0.0  ;;  %s1712_s8 = sld [smem:[#allocation2 + $0x301]]  ;;  %s1724_s1 = sld [smem:[#allocation2 + $0x200]] }
  0x81   : > { %v357_v27 = vsel %vm1684_vm3, %v334_v25, 0.0  ;;  %v355_v28 = vsel %vm1684_vm3, %v333_v26, 0.0  ;;  %v335_v33 = vsel %vm317_vm0, %v310_v29, %v324_v23  ;;  %v360_v34 = vsel %vm350_vm6, %v326_v32, 0.0  ;;  %s1714_s27 = sld [smem:[#allocation2 + $0x381]]  ;;  %s1726_s7 = sld [smem:[#allocation2 + $0x280]] }
  0x82   : > { %371 = vrot.lane.b32.xlu1 %v357_v27, %s1469_s17  ;;  %367 = vrot.lane.b32.xlu0 %v355_v28, %s1469_s17  ;;  %v359_v35 = vsel %vm1684_vm3, %v335_v33, 0.0  ;;  %s1728_s10 = sld [smem:[#allocation2 + $0x300]]  ;;  %s1736_s3 = sld [smem:[#allocation2 + $0x82]]  ;;  %v404_v36 = vstv %s1700_s6  ;;  %v431_v37 = vstv %s1702_s29 }
  0x83   : > { %2216 = sst [smem:[#allocation26_spill]] %s1706_s13  ;;  %s1730_s12 = sld [smem:[#allocation2 + $0x380]]  ;;  %v458_v38 = vstv %s1704_s26  ;;  %v485_v39 = vstv %s1706_s13  ;;  %v400_v44 = vstv %s1716_s9  ;;  %v427_v45 = vstv %s1718_s11 }
  0x84   : > { %s1734_s2 = sld [smem:[#allocation5]]  ;;  %s1738_s23 = sld [smem:[#allocation5 + $0x1]]  ;;  %v512_v40 = vstv %s1708_s14  ;;  %v454_v46 = vstv %s1720_s30 }
  0x85   : > { %s1740_s28 = sld [smem:[#allocation2 + $0x102]]  ;;  %s1746_s25 = sld [smem:[#allocation5 + $0x3]]  ;;  %v539_v41 = vstv %s1710_s0  ;;  %v481_v47 = vstv %s1722_s22 }
  0x86   : > { %373 = vrot.lane.b32.xlu1 %v358_v30, %s1469_s17  ;;  %369 = vrot.lane.b32.xlu0 %v356_v31, %s1469_s17  ;;  %s1742_s19 = sld [smem:[#allocation5 + $0x2]]  ;;  %s1750_s24 = sld [smem:[#allocation5 + $0x4]]  ;;  %v566_v42 = vstv %s1712_s8  ;;  %v508_v48 = vstv %s1724_s1 }
  0x87   : > { %2217 = sst [smem:[#allocation27_spill]] %s1726_s7  ;;  %s1744_s18 = sld [smem:[#allocation2 + $0x182]]  ;;  %v593_v43 = vstv %s1714_s27  ;;  %v535_v49 = vstv %s1726_s7 }
  0x88   : > { %s1748_s16 = sld [smem:[#allocation2 + $0x202]]  ;;  %s1754_s21 = sld [smem:[#allocation5 + $0x5]]  ;;  %v562_v50 = vstv %s1728_s10  ;;  %v437_v54 = vstv %s1736_s3 }
  0x89   : > { %s1752_s4 = sld [smem:[#allocation2 + $0x282]]  ;;  %s1758_s5 = sld [smem:[#allocation5 + $0x6]]  ;;  %v589_v51 = vstv %s1730_s12 }
  0x8a   : > { %377 = vrot.lane.b32.xlu1 %v360_v34, %s1469_s17  ;;  %375 = vrot.lane.b32.xlu0 %v359_v35, %s1469_s17  ;;  %s1732_s17 = sld [smem:[#allocation2 + $0x2]]  ;;  %v416_v53 = vstv %s1734_s2  ;;  %v443_v55 = vstv %s1738_s23  ;;  %s2224_s2 = sld [smem:[#allocation21_spill]] }
  0x8b   : > { %s1756_s20 = sld [smem:[#allocation2 + $0x302]]  ;;  %v464_v56 = vstv %s1740_s28  ;;  %v497_v59 = vstv %s1746_s25 }
  0x8c   : > { %s1764_s15 = sld [smem:[#allocation2 + $0x382]]  ;;  %v470_v57 = vstv %s1742_s19  ;;  %v524_v63 = vstv %s1750_s24 }
  0x8d   : > { %v491_v58 = vstv %s1744_s18  ;;  %s2222_s6 = sld [smem:[#allocation12_spill]] }
  0x8e   : > { %2218 = sst [smem:[#allocation28_spill]] %s1754_s21  ;;  %s1766_s21 = sld [smem:[#allocation5 + $0x7]]  ;;  %v518_v62 = vstv %s1748_s16 }
  0x8f   : > { %s2219_s13 = sld [smem:[#allocation28_spill]]  ;;  %v545_v0 = vstv %s1752_s4  ;;  %v578_v5 = vstv %s1758_s5 }
  0x90   : > { %v410_v52 = vstv %s1732_s17  ;;  %p2225_p7 = scmp.ne.s32.totalorder %s2224_s2, 0 }
  0x91   : > { %v572_v4 = vstv %s1756_s20  ;;  %s2226_s3 = sld [smem:[#allocation16_spill]] (%p2225_p7)  ;;  %s2227_s4 = sld [smem:[#allocation17_spill]] (%p2225_p7) }
  0x92   : > { %v599_v8 = vstv %s1764_s15  ;;  %s2228_s24 = sld [smem:[#allocation33_spill]] (%p2225_p7) }
  0x93   : > { %s283_s29 = sand.u32 1, %s2222_s6  }
  0x94   : > { %v605_v9 = vstv %s1766_s21 }
  0x95   : > { %v551_v1 = vstv %s2219_s13  ;;  %s999_s13 = sshll.u32 %s283_s29, 7 }
  0x96   : > { %s1923_s14 = scalar_lea.vmem [#allocation8], %s999_s13  }
  0x97   : > { %s1048_s15 = sshll.u32 (%p2225_p7), %s2226_s3, 1  ;;  %s1071_s16 = smul.u32 (%p2225_p7), 24, %s2227_s4 }
  0x98   : > { %s623_s18 = ssub.s32 (%p2225_p7), 3, %s1048_s15 }
  0x99   : > { %p624_p5 = scmp.lt.s32.totalorder (%p2225_p7), %s623_s18, 2  ;;  %s629_s19 = sadd.s32 (%p2225_p7), %s1071_s16, %s1048_s15 }
  0x9a   : > { %s1051_s20 = sshll.u32 (%p2225_p7), %s629_s19, 3 }
  0x9b   : > { %s2014_s5 = scalar_lea.vmem (%p2225_p7), %s2228_s24, %s1051_s20  }
  0xf4   : > { %v372_v60 = vpop.permute.xlu1 %371  ;;  %v368_v61 = vpop.permute.xlu0 %367 }
  0xf5   : > { %v388_v2 = vsel %vm385_vm7, 0.0, %v372_v60  ;;  %v386_v3 = vsel %vm385_vm7, 0.0, %v368_v61 }
  0xf6   : > { %v395_v6 = vsel %vm392_vm8, %v388_v2, 0.0  ;;  %v393_v7 = vsel %vm392_vm8, %v386_v3, 0.0 }
  0xf7   : > { %v405_v10 = vmul.f32 %v404_v36, %v395_v6  ;;  %v432_v11 = vmul.f32 %v431_v37, %v395_v6  ;;  %v459_v12 = vmul.f32 %v458_v38, %v395_v6  ;;  %v486_v13 = vmul.f32 %v485_v39, %v395_v6 }
  0xf8   : > { %v513_v14 = vmul.f32 %v512_v40, %v395_v6  ;;  %v540_v15 = vmul.f32 %v539_v41, %v395_v6  ;;  %v567_v16 = vmul.f32 %v566_v42, %v395_v6  ;;  %v594_v17 = vmul.f32 %v593_v43, %v395_v6  ;;  %v374_v18 = vpop.permute.xlu1 %373  ;;  %v370_v19 = vpop.permute.xlu0 %369 }
  0xf9   : > { %v401_v20 = vmul.f32 %v400_v44, %v393_v7  ;;  %v428_v21 = vmul.f32 %v427_v45, %v393_v7  ;;  %v455_v22 = vmul.f32 %v454_v46, %v393_v7  ;;  %v482_v23 = vmul.f32 %v481_v47, %v393_v7 }
  0xfa   : > { %v509_v24 = vmul.f32 %v508_v48, %v393_v7  ;;  %v536_v25 = vmul.f32 %v535_v49, %v393_v7  ;;  %v563_v26 = vmul.f32 %v562_v50, %v393_v7  ;;  %v590_v27 = vmul.f32 %v589_v51, %v393_v7 }
  0xfb   : > { %v1832_v28 = vadd.f32 %v405_v10, %v401_v20  ;;  %v1834_v29 = vadd.f32 %v432_v11, %v428_v21  ;;  %v1836_v30 = vadd.f32 %v459_v12, %v455_v22  ;;  %v1838_v31 = vadd.f32 %v486_v13, %v482_v23 }
  0xfc   : > { %v1840_v32 = vadd.f32 %v513_v14, %v509_v24  ;;  %v1842_v33 = vadd.f32 %v540_v15, %v536_v25  ;;  %v1844_v34 = vadd.f32 %v567_v16, %v563_v26  ;;  %v1846_v35 = vadd.f32 %v594_v17, %v590_v27  ;;  %v378_v60 = vpop.permute.xlu1 %377  ;;  %v376_v61 = vpop.permute.xlu0 %375 }
  0xfd   : > { %v389_v2 = vsel %vm385_vm7, 0.0, %v374_v18  ;;  %v387_v3 = vsel %vm385_vm7, 0.0, %v370_v19  ;;  %v391_v6 = vsel %vm385_vm7, 0.0, %v378_v60  ;;  %v390_v7 = vsel %vm385_vm7, 0.0, %v376_v61 }
  0xfe   : > { %v396_v10 = vsel %vm392_vm8, %v389_v2, 0.0  ;;  %v394_v11 = vsel %vm392_vm8, %v387_v3, 0.0  ;;  %v398_v12 = vsel %vm392_vm8, %v391_v6, 0.0  ;;  %v1856_v13 = vsel %vm392_vm8, %v390_v7, 0.0 }
  0xff   : > { %v406_v14 = vmul.f32 %v404_v36, %v396_v10  ;;  %v433_v15 = vmul.f32 %v431_v37, %v396_v10  ;;  %v460_v16 = vmul.f32 %v458_v38, %v396_v10  ;;  %v487_v17 = vmul.f32 %v485_v39, %v396_v10 }
 0x100   : > { %v514_v18 = vmul.f32 %v512_v40, %v396_v10  ;;  %v541_v19 = vmul.f32 %v539_v41, %v396_v10  ;;  %v568_v20 = vmul.f32 %v566_v42, %v396_v10  ;;  %v595_v21 = vmul.f32 %v593_v43, %v396_v10 }
 0x101   : > { %v402_v22 = vmul.f32 %v400_v44, %v394_v11  ;;  %v429_v23 = vmul.f32 %v427_v45, %v394_v11  ;;  %v456_v36 = vmul.f32 %v454_v46, %v394_v11  ;;  %v483_v37 = vmul.f32 %v481_v47, %v394_v11 }
 0x102   : > { %v510_v38 = vmul.f32 %v508_v48, %v394_v11  ;;  %v537_v39 = vmul.f32 %v535_v49, %v394_v11  ;;  %v564_v40 = vmul.f32 %v562_v50, %v394_v11  ;;  %v591_v41 = vmul.f32 %v589_v51, %v394_v11 }
 0x103   : > { %v408_v42 = vadd.f32 %v406_v14, %v402_v22  ;;  %v435_v43 = vadd.f32 %v433_v15, %v429_v23  ;;  %v462_v44 = vadd.f32 %v460_v16, %v456_v36  ;;  %v489_v45 = vadd.f32 %v487_v17, %v483_v37 }
 0x104   : > { %v516_v46 = vadd.f32 %v514_v18, %v510_v38  ;;  %v543_v47 = vadd.f32 %v541_v19, %v537_v39  ;;  %v570_v24 = vadd.f32 %v568_v20, %v564_v40  ;;  %v597_v48 = vadd.f32 %v595_v21, %v591_v41 }
 0x105   : > { %v412_v49 = vmul.f32 %v410_v52, %v398_v12  ;;  %v439_v25 = vmul.f32 %v437_v54, %v398_v12  ;;  %v466_v50 = vmul.f32 %v464_v56, %v398_v12  ;;  %v493_v51 = vmul.f32 %v491_v58, %v398_v12 }
 0x106   : > { %v520_v26 = vmul.f32 %v518_v62, %v398_v12  ;;  %v547_v27 = vmul.f32 %v545_v0, %v398_v12  ;;  %v574_v60 = vmul.f32 %v572_v4, %v398_v12  ;;  %v601_v61 = vmul.f32 %v599_v8, %v398_v12 }
 0x107   : > { %v414_v2 = vadd.f32 %v412_v49, %v408_v42  ;;  %v441_v3 = vadd.f32 %v439_v25, %v435_v43  ;;  %v468_v6 = vadd.f32 %v466_v50, %v462_v44  ;;  %v495_v7 = vadd.f32 %v493_v51, %v489_v45 }
 0x108   : > { %v522_v10 = vadd.f32 %v520_v26, %v516_v46  ;;  %v549_v11 = vadd.f32 %v547_v27, %v543_v47  ;;  %v576_v14 = vadd.f32 %v574_v60, %v570_v24  ;;  %v603_v15 = vadd.f32 %v601_v61, %v597_v48 }
 0x109   : > { %v418_v16 = vadd.f32 %v416_v53, %v414_v2  ;;  %v445_v17 = vadd.f32 %v443_v55, %v441_v3  ;;  %v472_v18 = vadd.f32 %v470_v57, %v468_v6  ;;  %v499_v19 = vadd.f32 %v497_v59, %v495_v7 }
 0x10a   : > { %v526_v12 = vadd.f32 %v524_v63, %v522_v10  ;;  %v553_v20 = vadd.f32 %v551_v1, %v549_v11  ;;  %v580_v21 = vadd.f32 %v578_v5, %v576_v14  ;;  %v607_v22 = vadd.f32 %v605_v9, %v603_v15 }
 0x10b   : > { %v420_v23 = vmax.f32 %v418_v16, 0.0  ;;  %v447_v36 = vmax.f32 %v445_v17, 0.0  ;;  %v474_v37 = vmax.f32 %v472_v18, 0.0  ;;  %v501_v38 = vmax.f32 %v499_v19, 0.0 }
 0x10c   : > { %v528_v39 = vmax.f32 %v526_v12, 0.0  ;;  %v555_v40 = vmax.f32 %v553_v20, 0.0  ;;  %v582_v41 = vmax.f32 %v580_v21, 0.0  ;;  %v609_v42 = vmax.f32 %v607_v22, 0.0 }
 0x10d   : > { %v422_v43 = vmin.f32 %v420_v23, 1.0  ;;  %v449_v44 = vmin.f32 %v447_v36, 1.0  ;;  %v476_v45 = vmin.f32 %v474_v37, 1.0  ;;  %v503_v46 = vmin.f32 %v501_v38, 1.0 }
 0x10e   : > { %v530_v47 = vmin.f32 %v528_v39, 1.0  ;;  %v557_v24 = vmin.f32 %v555_v40, 1.0  ;;  %v584_v48 = vmin.f32 %v582_v41, 1.0  ;;  %v611_v49 = vmin.f32 %v609_v42, 1.0 }
 0x10f   : > { %425 = vst.msk [vmem:[%s1923_s14 + $0x8] sm:$0xff] %vm423_vm9, %v422_v43  ;;  %1010 = vst.msk [vmem:[%s1923_s14 + $0x18] sm:$0xff] %vm423_vm9, %v449_v44  ;;  %v411_v25 = vmul.f32 %v410_v52, %v1856_v13  ;;  %v438_v50 = vmul.f32 %v437_v54, %v1856_v13  ;;  %v465_v51 = vmul.f32 %v464_v56, %v1856_v13 }
 0x110   : > { %1016 = vst.msk [vmem:[%s1923_s14 + $0x28] sm:$0xff] %vm423_vm9, %v476_v45  ;;  %1022 = vst.msk [vmem:[%s1923_s14 + $0x38] sm:$0xff] %vm423_vm9, %v503_v46  ;;  %v492_v26 = vmul.f32 %v491_v58, %v1856_v13  ;;  %v519_v52 = vmul.f32 %v518_v62, %v1856_v13  ;;  %v546_v54 = vmul.f32 %v545_v0, %v1856_v13 }
 0x111   : > { %1028 = vst.msk [vmem:[%s1923_s14 + $0x48] sm:$0xff] %vm423_vm9, %v530_v47  ;;  %1034 = vst.msk [vmem:[%s1923_s14 + $0x58] sm:$0xff] %vm423_vm9, %v557_v24  ;;  %v573_v56 = vmul.f32 %v572_v4, %v1856_v13  ;;  %v600_v58 = vmul.f32 %v599_v8, %v1856_v13  ;;  %v413_v27 = vadd.f32 %v411_v25, %v1832_v28 }
 0x112   : > { %1040 = vst.msk [vmem:[%s1923_s14 + $0x68] sm:$0xff] %vm423_vm9, %v584_v48  ;;  %1046 = vst.msk [vmem:[%s1923_s14 + $0x78] sm:$0xff] %vm423_vm9, %v611_v49  ;;  %v440_v60 = vadd.f32 %v438_v50, %v1834_v29  ;;  %v467_v61 = vadd.f32 %v465_v51, %v1836_v30  ;;  %v494_v62 = vadd.f32 %v492_v26, %v1838_v31 }
 0x113   : > { %v521_v2 = vadd.f32 %v519_v52, %v1840_v32  ;;  %v548_v0 = vadd.f32 %v546_v54, %v1842_v33  ;;  %v575_v3 = vadd.f32 %v573_v56, %v1844_v34  ;;  %v602_v4 = vadd.f32 %v600_v58, %v1846_v35 }
 0x114   : > { %v417_v6 = vadd.f32 %v416_v53, %v413_v27  ;;  %v444_v8 = vadd.f32 %v443_v55, %v440_v60  ;;  %v471_v28 = vadd.f32 %v470_v57, %v467_v61  ;;  %v498_v29 = vadd.f32 %v497_v59, %v494_v62 }
 0x115   : > { %v525_v30 = vadd.f32 %v524_v63, %v521_v2  ;;  %v552_v31 = vadd.f32 %v551_v1, %v548_v0  ;;  %v579_v32 = vadd.f32 %v578_v5, %v575_v3  ;;  %v606_v33 = vadd.f32 %v605_v9, %v602_v4 }
 0x116   : > { %v419_v13 = vmax.f32 %v417_v6, 0.0  ;;  %v446_v34 = vmax.f32 %v444_v8, 0.0  ;;  %v473_v35 = vmax.f32 %v471_v28, 0.0  ;;  %v500_v53 = vmax.f32 %v498_v29, 0.0 }
 0x117   : > { %v527_v55 = vmax.f32 %v525_v30, 0.0  ;;  %v554_v57 = vmax.f32 %v552_v31, 0.0  ;;  %v581_v59 = vmax.f32 %v579_v32, 0.0  ;;  %v608_v63 = vmax.f32 %v606_v33, 0.0  ;;  %621 = sbr.rel (!%p2225_p7) target bundleno = 335 (0x14f), region = 52 }
 0x118   : > { %v421_v1 = vmin.f32 %v419_v13, 1.0  ;;  %v448_v5 = vmin.f32 %v446_v34, 1.0  ;;  %v475_v7 = vmin.f32 %v473_v35, 1.0  ;;  %v502_v9 = vmin.f32 %v500_v53, 1.0 }
 0x119   : > { %v529_v10 = vmin.f32 %v527_v55, 1.0  ;;  %v556_v11 = vmin.f32 %v554_v57, 1.0  ;;  %v583_v14 = vmin.f32 %v581_v59, 1.0  ;;  %v610_v15 = vmin.f32 %v608_v63, 1.0 }
 0x11a   : > { %424 = vst.msk [vmem:[%s1923_s14] sm:$0xff] %vm423_vm9, %v421_v1  ;;  %1009 = vst.msk [vmem:[%s1923_s14 + $0x10] sm:$0xff] %vm423_vm9, %v448_v5 }
 0x11b   : > { %1015 = vst.msk [vmem:[%s1923_s14 + $0x20] sm:$0xff] %vm423_vm9, %v475_v7  ;;  %1021 = vst.msk [vmem:[%s1923_s14 + $0x30] sm:$0xff] %vm423_vm9, %v502_v9 }
 0x11c   : > { %1027 = vst.msk [vmem:[%s1923_s14 + $0x40] sm:$0xff] %vm423_vm9, %v529_v10  ;;  %1033 = vst.msk [vmem:[%s1923_s14 + $0x50] sm:$0xff] %vm423_vm9, %v556_v11 }
 0x11d   : > { %1039 = vst.msk [vmem:[%s1923_s14 + $0x60] sm:$0xff] %vm423_vm9, %v583_v14  ;;  %1045 = vst.msk [vmem:[%s1923_s14 + $0x70] sm:$0xff] %vm423_vm9, %v610_v15 }
 0x11e   : > { %s2252_s18 = smov (!%p624_p5, %s623_s18), 2 }
 0x11f   : > { %s1049_s25 = sshll.u32 %s2252_s18, 10 }
 0x120   : > { %p1052_p3 = scmp.eq.s32.totalorder %s1049_s25, 0 }
 0x121   : > { %s2018_s28 = sshrl.u32 (!%p1052_p3), %s2252_s18, 1 }
 0x122   : > { %634 = sbr.rel (%p1052_p3) target bundleno = 335 (0x14f), region = 56  ;;  %p1053_p10 = scmp.le.s32.totalorder (!%p1052_p3), %s2018_s28, 0 }
 0x129   : > { %906 = sbr.rel (%p1053_p10) target bundleno = 314 (0x13a), region = 149  ;;  %s2229_s0 = smov (!%p1053_p10), %s2014_s5 }
 0x12a   : > { %s2230_s8 = smov (!%p1053_p10), %s1923_s14  ;;  %s2027_s27 = smov (!%p1053_p10), 0  }
 0x12b   : > { %s2029_s9 = smov (!%p1053_p10), 0  }
 0x130 LB: >> { %v740_v16 = vld [vmem:[%s1438_s8] sm:$0xff]  ;;  %v742_v17 = vld [vmem:[%s1438_s8 + $0x8] sm:$0xff]  ;;  %v744_v18 = vld [vmem:[%s1438_s8 + $0x10] sm:$0xff]  ;;  %s772_s11 = sadd.s32 1, %s1442_s27  ;;  %s734_s9 = sadd.s32 1, %s1446_s9   ;;  %s1446_s9 = sphi %s2029_s9, %s734_s9   ;;  %s1442_s27 = sphi %s2027_s27, %s2231_s27   ;;  %s1438_s8 = sphi %s2230_s8, %s777_s8   ;;  %s1434_s0 = sphi %s2229_s0, %s778_s0  }
 0x131   : >> { %741 = vst [vmem:[%s1434_s0] sm:$0xff] %v740_v16  ;;  %743 = vst [vmem:[%s1434_s0 + $0x8] sm:$0xff] %v742_v17  ;;  %v746_v19 = vld [vmem:[%s1438_s8 + $0x18] sm:$0xff]  ;;  %v748_v12 = vld [vmem:[%s1438_s8 + $0x20] sm:$0xff]  ;;  %p773_p11 = scmp.ge.s32.totalorder %s772_s11, %s2018_s28  ;;  %p733_p0 = scmp.ge.s32.totalorder %s734_s9, %s2018_s28 }
 0x132   : >> { %745 = vst [vmem:[%s1434_s0 + $0x18] sm:$0xff] %v744_v18  ;;  %v750_v20 = vld [vmem:[%s1438_s8 + $0x28] sm:$0xff]  ;;  %747 = vst [vmem:[%s1434_s0 + $0x20] sm:$0xff] %v746_v19  ;;  %v752_v21 = vld [vmem:[%s1438_s8 + $0x30] sm:$0xff] }
 0x133   : >> { %749 = vst [vmem:[%s1434_s0 + $0x30] sm:$0xff] %v748_v12  ;;  %751 = vst [vmem:[%s1434_s0 + $0x38] sm:$0xff] %v750_v20  ;;  %v754_v22 = vld [vmem:[%s1438_s8 + $0x38] sm:$0xff]  ;;  %v756_v23 = vld [vmem:[%s1438_s8 + $0x40] sm:$0xff]  ;;  %s2254_s11 = smov (%p773_p11, %s772_s11), 0  ;;  %736 = sbr.rel (!%p733_p0) target bundleno = 304 (0x130), region = 155 }
 0x134   : >> { %753 = vst [vmem:[%s1434_s0 + $0x48] sm:$0xff] %v752_v21  ;;  %755 = vst [vmem:[%s1434_s0 + $0x50] sm:$0xff] %v754_v22  ;;  %v758_v36 = vld [vmem:[%s1438_s8 + $0x48] sm:$0xff]  ;;  %v760_v37 = vld [vmem:[%s1438_s8 + $0x50] sm:$0xff]  ;;  %s1054_s30 = sshll.u32 %s2254_s11, 4  ;;  %s2231_s27 = smov %s2254_s11 }
 0x135   : >> { %757 = vst [vmem:[%s1434_s0 + $0x60] sm:$0xff] %v756_v23  ;;  %v762_v38 = vld [vmem:[%s1438_s8 + $0x58] sm:$0xff]  ;;  %759 = vst [vmem:[%s1434_s0 + $0x68] sm:$0xff] %v758_v36  ;;  %v764_v39 = vld [vmem:[%s1438_s8 + $0x60] sm:$0xff] }
 0x136   : >> { %761 = vst [vmem:[%s1434_s0 + $0x78] sm:$0xff] %v760_v37  ;;  %763 = vst [vmem:[%s1434_s0 + $0x80] sm:$0xff] %v762_v38  ;;  %v766_v40 = vld [vmem:[%s1438_s8 + $0x68] sm:$0xff]  ;;  %v768_v41 = vld [vmem:[%s1438_s8 + $0x70] sm:$0xff] }
 0x137   : >> { %765 = vst [vmem:[%s1434_s0 + $0x90] sm:$0xff] %v764_v39  ;;  %767 = vst [vmem:[%s1434_s0 + $0x98] sm:$0xff] %v766_v40  ;;  %v770_v42 = vld [vmem:[%s1438_s8 + $0x78] sm:$0xff]  ;;  %s777_s8 = scalar_lea.vmem %s1923_s14, %s1054_s30 [#allocation8]  }
 0x138   : >> { %769 = vst [vmem:[%s1434_s0 + $0xa8] sm:$0xff] %v768_v41  ;;  %771 = vst [vmem:[%s1434_s0 + $0xb0] sm:$0xff] %v770_v42  ;;  %s778_s0 = scalar_lea.vmem %s2014_s5, %s1054_s30  }
 0x13a PF: > { %s2087_s22 = sand.u32 1, %s2252_s18   ;;  %s1064_s1 = sshll.u32 %s2018_s28, 4 }
 0x13b   : > { %s2091_s7 = scalar_lea.vmem %s1923_s14, %s1064_s1 [#allocation8]   ;;  %s2094_s10 = scalar_lea.vmem %s2014_s5, %s1064_s1  }
 0x13c   : > { %p1059_p8 = scmp.le.s32.totalorder %s2087_s22, 0 }
 0x13d   : > { %s2232_s12 = smov (!%p1059_p8), %s2094_s10  ;;  %s2233_s17 = smov (!%p1059_p8), %s2091_s7 }
 0x13e   : > { %920 = sbr.rel (%p1059_p8) target bundleno = 335 (0x14f), region = 160  ;;  %s2103_s6 = smov (!%p1059_p8), 0  }
 0x13f   : > { %s2105_s29 = smov (!%p1059_p8), 0  }
 0x145 LB: >> { %v795_v43 = vld [vmem:[%s1454_s17] sm:$0xff]  ;;  %v797_v44 = vld [vmem:[%s1454_s17 + $0x10] sm:$0xff]  ;;  %s811_s26 = sadd.s32 1, %s1458_s6  ;;  %s789_s29 = sadd.s32 1, %s1462_s29   ;;  %s1462_s29 = sphi %s2105_s29, %s789_s29   ;;  %s1458_s6 = sphi %s2103_s6, %s2234_s6   ;;  %s1454_s17 = sphi %s2233_s17, %s816_s17   ;;  %s1450_s12 = sphi %s2232_s12, %s817_s12  }
 0x146   : >> { %v799_v45 = vld [vmem:[%s1454_s17 + $0x20] sm:$0xff]  ;;  %796 = vst [vmem:[%s1450_s12] sm:$0xff] %v795_v43  ;;  %798 = vst [vmem:[%s1450_s12 + $0x18] sm:$0xff] %v797_v44  ;;  %v801_v46 = vld [vmem:[%s1454_s17 + $0x30] sm:$0xff]  ;;  %p812_p12 = scmp.ge.s32.totalorder %s811_s26, %s2087_s22  ;;  %p788_p4 = scmp.ge.s32.totalorder %s789_s29, %s2087_s22 }
 0x147   : >> { %800 = vst [vmem:[%s1450_s12 + $0x30] sm:$0xff] %v799_v45  ;;  %v803_v47 = vld [vmem:[%s1454_s17 + $0x40] sm:$0xff]  ;;  %v805_v24 = vld [vmem:[%s1454_s17 + $0x50] sm:$0xff]  ;;  %802 = vst [vmem:[%s1450_s12 + $0x48] sm:$0xff] %v801_v46 }
 0x148   : >> { %804 = vst [vmem:[%s1450_s12 + $0x60] sm:$0xff] %v803_v47  ;;  %806 = vst [vmem:[%s1450_s12 + $0x78] sm:$0xff] %v805_v24  ;;  %v807_v48 = vld [vmem:[%s1454_s17 + $0x60] sm:$0xff]  ;;  %v809_v49 = vld [vmem:[%s1454_s17 + $0x70] sm:$0xff]  ;;  %s2256_s26 = smov (%p812_p12, %s811_s26), 0  ;;  %791 = sbr.rel (!%p788_p4) target bundleno = 325 (0x145), region = 166 }
 0x149   : >> { %808 = vst [vmem:[%s1450_s12 + $0x90] sm:$0xff] %v807_v48  ;;  %810 = vst [vmem:[%s1450_s12 + $0xa8] sm:$0xff] %v809_v49  ;;  %s1060_s13 = sshll.u32 %s2256_s26, 3  ;;  %s2234_s6 = smov %s2256_s26 }
 0x14a   : >> { %s816_s17 = scalar_lea.vmem %s2091_s7, %s1060_s13 [#allocation8]   ;;  %s817_s12 = scalar_lea.vmem %s2094_s10, %s1060_s13  }
 0x14f PF: > { %s2235_s14 = sld [smem:[#allocation20_spill]]  ;;  %s2236_s15 = sld [smem:[#allocation13_spill]] }
 0x150   : > { %s2237_s16 = sld [smem:[#allocation24_spill]]  ;;  %s2238_s17 = sld [smem:[#allocation14_spill]] }
 0x151   : > { %s2239_s18 = sld [smem:[#allocation15_spill]]  ;;  %s2240_s19 = sld [smem:[#allocation25_spill]] }
 0x152   : > { %s2241_s20 = sld [smem:[#allocation18_spill]]  ;;  %s2242_s21 = sld [smem:[#allocation19_spill]] }
 0x153   : > { %s2243_s22 = sld [smem:[#allocation22_spill]]  ;;  %s2244_s23 = sld [smem:[#allocation23_spill]] }
 0x155   : > { %s19_s24 = sadd.s32 1, %s2235_s14  }
 0x156   : > { %p16_p6 = scmp.ge.s32.totalorder %s19_s24, 6  }
 0x158   :  { %18 = sbr.rel (!%p16_p6) target bundleno = 14 (0xe), region = 177 }
 0x15f   :  { %833 = vsyncpa [#allocation3], 1 }
 0x160   :  { %835 = vsyncpa [#allocation3 + $0x1], 1 }
 0x161   :  { %836 = vsyncpa [#allocation4], 1 }
 0x162   :  { %838 = vsyncpa [#allocation4 + $0x1], 1 }
 0x163   :  { %839 = vsyncpa [#allocation6], 1 }

// kernel: tpu_custom_call.1
= control target key start
LH: loop header
LB: loop body
LE: loop exit
PB: predicated region body
PF: predicated region fallthrough
CT: control target
= control target key end

     0   :  { %8 = vsyncpa [#allocation3], 0  ;;  %s2011_s0 = inlined_call_operand.vmem [shape: f32[8,3], index: 0, kind: input, shape index: {}]   ;;  %s2012_s1 = inlined_call_operand.vmem [shape: f32[8], index: 1, kind: input, shape index: {}]   ;;  %s2013_s2 = inlined_call_operand.vmem [shape: f32[2,3,18,18], index: 2, kind: input, shape index: {}]   ;;  %s2014_s3 = inlined_call_operand.vmem [shape: f32[2,8,18,18], index: 3, kind: output, shape index: {}]  }
   0x1   :  { %9 = vsyncpa [#allocation5], 0  ;;  %s1518_s12 = smov 0   ;;  %s1520_s13 = smov 0  }
   0x2   :  { %s1522_s14 = smov 0   ;;  %s1524_s15 = smov 0  }
   0x3   :  { %s1526_s16 = smov 0   ;;  %s1528_s17 = smov 0  }
   0x4   :  { %s1530_s18 = smov 0  }
   0x5 LB: > { %s977_s19 = sadd.s32 4294967295, %s1430_s18   ;;  %s24_s20 = sadd.s32 1, %s1422_s16  ;;  %s1430_s18 = sphi %s1530_s18, %s15_s18   ;;  %s1426_s17 = sphi %s1528_s17, %s2041_s17   ;;  %s1422_s16 = sphi %s1526_s16, %s2040_s16   ;;  %s1418_s15 = sphi %s1524_s15, %s2039_s15   ;;  %s1414_s14 = sphi %s1522_s14, %s2038_s14   ;;  %s1410_s13 = sphi %s1520_s13, %s2037_s13   ;;  %s1406_s12 = sphi %s1518_s12, %s2036_s12  }
   0x6   : > { %p25_p0 = scmp.ge.s32.totalorder %s24_s20, 2  ;;  %s27_s21 = sadd.s32 1, %s1426_s17 }
   0x7   : > { %s78_s22 = sadd.s32 1, %s1410_s13  ;;  %p85_p1 = scmp.ne.s32.totalorder %s1410_s13, %s1406_s12 }
   0x8   : > { %s2043_s20 = smov (%p25_p0, %s24_s20), 0  ;;  %s2045_s21 = smov (!%p25_p0, %s27_s21), %s1426_s17 }
   0x9   : > { %s74_s23 = ssub.s32 %s1422_s16, %s2043_s20  ;;  %p86_p2 = scmp.eq.s32.totalorder %s1430_s18, 0 }
   0xa   : > { %p29_p3 = scmp.ge.s32.totalorder %s2045_s21, 2  ;;  %p117_p4 = scmp.eq.s32.totalorder %s977_s19, 3 }
   0xb   : > { %p1565_p5 = por %p86_p2, %p85_p1  ;;  %p979_p6 = scmp.ge.s32.totalorder %s1430_s18, 1 }
   0xc   : > { %s2047_s21 = smov (%p29_p3, %s2045_s21), 0  ;;  %p1572_p7 = por %p117_p4, %p85_p1 }
   0xd   : > { %s2018_s24 = scalar_select %p1565_p5, 1, 0 }
   0xe   : > { %s2019_s25 = scalar_select %p1572_p7, 1, 0 }
   0xf   : > { %p130_p8 = scmp.lt.s32.totalorder %s1430_s18, 5  ;;  %s73_s26 = ssub.s32 %s1426_s17, %s2047_s21 }
  0x10   : > { %s75_s27 = sor.u32 %s74_s23, %s73_s26  ;;  %p1583_p11 = scmp.eq.s32.totalorder %s977_s19, 0 }
  0x11   : > { %p1579_p9 = pnand %p979_p6, %p130_p8  ;;  %p76_p10 = scmp.eq.s32.totalorder %s75_s27, 0 }
  0x12   : > { %s2021_s29 = scalar_select %p1583_p11, 1, 0 }
  0x13   : > { %s2020_s28 = scalar_select %p1579_p9, 1, 0 }
  0x14   : > { %p1077_p12 = pneg %p1579_p9  ;;  %s143_s5 = sshll.u32 %s2011_s0, 4  ;;  %s144_s5 = int_to_ptr.vmem [resolvable:$true] %s143_s5 }
  0x15   : > { %s1593_s6 = scalar_select %p76_p10, %s1410_s13, %s78_s22  }
  0x16   : > { %p1597_p13 = pnand %p1583_p11, %p1077_p12  ;;  %s154_s10 = sshll.u32 %s2012_s1, 4  ;;  %s155_s10 = int_to_ptr.vmem [resolvable:$true] %s154_s10 }
  0x17   : > { %s1274_s11 = scalar_lea.vmem %s144_s5, 128  ;;  %p1282_p4 = scmp.lt.s32.totalorder %s144_s5, %s144_s5 }
  0x18   : > { %p1275_p0 = scmp.ne.s32.totalorder %s144_s5, %s1274_s11  ;;  %p1276_p1 = pneg %p1597_p13 }
  0x19   : > { %p1283_p6 = scmp.lt.s32.totalorder %s1274_s11, %s1274_s11 }
  0x1a   : > { %p1277_p2 = pnand %p1276_p1, %p1275_p0 }
  0x1b   : > { %p1284_p8 = por %p1283_p6, %p1282_p4 }
  0x1c   : > { %p1278_p3 = pneg %p1277_p2 }
  0x1e   : > { %p1285_p10 = pnand %p1284_p8, %p1278_p3 }
  0x20   : > { %1288 = shalt.err (!%p1285_p10)
}
  0x21   : > { %s1496_s19 = smov [#allocation2]   ;;  %s1289_s22 = scalar_lea.vmem %s155_s10, 16 }
  0x22   : > { %1080 = dma.vmem_to_smem (!%p1597_p13), %s144_s5, 128, %s1496_s19, [#allocation3]  }
  0x23   : > { %p1290_p12 = scmp.ne.s32.totalorder %s155_s10, %s1289_s22  ;;  %p1297_p9 = scmp.lt.s32.totalorder %s155_s10, %s155_s10 }
  0x24   : > { %p1298_p5 = scmp.lt.s32.totalorder %s1289_s22, %s1289_s22 }
  0x25   : > { %p1292_p7 = pnand %p1290_p12, %p1276_p1 }
  0x26   : > { %p1299_p0 = por %p1298_p5, %p1297_p9 }
  0x27   : > { %p1293_p11 = pneg %p1292_p7 }
  0x29   : > { %p1300_p2 = pnand %p1299_p0, %p1293_p11 }
  0x2b   : > { %1303 = shalt.err (!%p1300_p2)
}
  0x2c   : > { %s1497_s23 = smov [#allocation4]   ;;  %p982_p3 = scmp.ge.s32.totalorder %s1430_s18, 4 }
  0x2d   : > { %1083 = dma.vmem_to_smem (!%p1597_p13), %s155_s10, 16, %s1497_s23, [#allocation5]  }
  0x2e   : > { %161 = sbr.rel (%p982_p3) target bundleno = 110 (0x6e), region = 24  ;;  %p2023_p4 = scmp.ne.s32.totalorder (!%p982_p3), %s2018_s24, 0 }
  0x35   : > { %164 = sbr.rel (!%p2023_p4) target bundleno = 110 (0x6e), region = 28  ;;  %s166_s26 = sand.u32 (%p2023_p4), 1, %s1410_s13  }
  0x36   : > { %s983_s27 = sshll.u32 (%p2023_p4), %s1422_s16, 1  ;;  %s1065_s30 = smul.u32 (%p2023_p4), 48, %s166_s26 }
  0x37   : > { %s170_s4 = ssub.s32 (%p2023_p4), 3, %s983_s27  ;;  %s1066_s5 = smul.u32 (%p2023_p4), 9, %s1426_s17 }
  0x38   : > { %p171_p5 = scmp.lt.s32.totalorder (%p2023_p4), %s170_s4, 2  ;;  %s1624_s19 = scalar_lea.vmem (%p2023_p4), [#allocation6], %s1065_s30  }
  0x39   : > { %s176_s7 = sadd.s32 (%p2023_p4), %s1066_s5, %s983_s27 }
  0x3a   : > { %s985_s9 = sshll.u32 (%p2023_p4), %s176_s7, 3 }
  0x3b   : > { %s1622_s24 = scalar_lea.vmem (%p2023_p4), %s2013_s2, %s985_s9  }
  0x3c   : > { %s2049_s4 = smov (!%p171_p5, %s170_s4), 2 }
  0x3d   : > { %s173_s8 = smul.u32 384, %s2049_s4 }
  0x3f   : > { %p986_p7 = scmp.eq.s32.totalorder %s173_s8, 0 }
  0x40   : > { %s1627_s22 = sshrl.u32 (!%p986_p7), %s2049_s4, 1 }
  0x41   : > { %181 = sbr.rel (%p986_p7) target bundleno = 110 (0x6e), region = 32  ;;  %p987_p9 = scmp.le.s32.totalorder (!%p986_p7), %s1627_s22, 0 }
  0x48   : > { %876 = sbr.rel (%p987_p9) target bundleno = 89 (0x59), region = 197  ;;  %s2024_s23 = smov (!%p987_p9), %s1624_s19 }
  0x49   : > { %s2025_s26 = smov (!%p987_p9), %s1622_s24  ;;  %s1636_s27 = smov (!%p987_p9), 0  }
  0x4a   : > { %s1638_s5 = smov (!%p987_p9), 0  }
  0x4f LB: >> { %v257_v0 = vld [vmem:[%s1438_s26] sm:$0xff]  ;;  %v259_v1 = vld [vmem:[%s1438_s26 + $0x8] sm:$0xff]  ;;  %v261_v2 = vld [vmem:[%s1438_s26 + $0x18] sm:$0xff]  ;;  %s269_s30 = sadd.s32 1, %s1442_s27  ;;  %s251_s5 = sadd.s32 1, %s1446_s5   ;;  %s1446_s5 = sphi %s1638_s5, %s251_s5   ;;  %s1442_s27 = sphi %s1636_s27, %s2026_s27   ;;  %s1438_s26 = sphi %s2025_s26, %s274_s26   ;;  %s1434_s23 = sphi %s2024_s23, %s275_s23  }
  0x50   : >> { %258 = vst [vmem:[%s1434_s23] sm:$0xff] %v257_v0  ;;  %260 = vst [vmem:[%s1434_s23 + $0x8] sm:$0xff] %v259_v1  ;;  %v263_v3 = vld [vmem:[%s1438_s26 + $0x20] sm:$0xff]  ;;  %v265_v4 = vld [vmem:[%s1438_s26 + $0x30] sm:$0xff]  ;;  %p270_p11 = scmp.ge.s32.totalorder %s269_s30, %s1627_s22  ;;  %p250_p13 = scmp.ge.s32.totalorder %s251_s5, %s1627_s22 }
  0x51   : >> { %262 = vst [vmem:[%s1434_s23 + $0x10] sm:$0xff] %v261_v2  ;;  %v267_v5 = vld [vmem:[%s1438_s26 + $0x38] sm:$0xff]  ;;  %264 = vst [vmem:[%s1434_s23 + $0x18] sm:$0xff] %v263_v3 }
  0x52   : >> { %266 = vst [vmem:[%s1434_s23 + $0x20] sm:$0xff] %v265_v4  ;;  %268 = vst [vmem:[%s1434_s23 + $0x28] sm:$0xff] %v267_v5  ;;  %s2051_s30 = smov (%p270_p11, %s269_s30), 0  ;;  %253 = sbr.rel (!%p250_p13) target bundleno = 79 (0x4f), region = 203 }
  0x53   : >> { %s988_s7 = sshll.u32 %s2051_s30, 4  ;;  %s2026_s27 = smov %s2051_s30 }
  0x54   : >> { %s274_s26 = scalar_lea.vmem %s1622_s24, %s988_s7   ;;  %s275_s23 = scalar_lea.vmem %s1624_s19, %s988_s7 [#allocation6]  }
  0x59 PF: > { %s1657_s8 = sand.u32 1, %s2049_s4   ;;  %s1061_s9 = sshll.u32 %s1627_s22, 4 }
  0x5a   : > { %s1661_s10 = scalar_lea.vmem %s1622_s24, %s1061_s9   ;;  %s1664_s11 = scalar_lea.vmem %s1624_s19, %s1061_s9 [#allocation6]  }
  0x5b   : > { %p993_p1 = scmp.le.s32.totalorder %s1657_s8, 0 }
  0x5c   : > { %s1448_s30 = smov (!%p993_p1), %s1664_s11   ;;  %s1452_s5 = smov (!%p993_p1), %s1661_s10  }
  0x5d   : > { %890 = sbr.rel (%p993_p1) target bundleno = 110 (0x6e), region = 208  ;;  %s1456_s7 = smov (!%p993_p1), 0  }
  0x5e   : > { %s1460_s23 = smov (!%p993_p1), 0  }
  0x64 LB: >> { %v292_v6 = vld [vmem:[%s1454_s5] sm:$0xff]  ;;  %v294_v7 = vld [vmem:[%s1454_s5 + $0x18] sm:$0xff]  ;;  %v296_v8 = vld [vmem:[%s1454_s5 + $0x30] sm:$0xff]  ;;  %s298_s4 = sadd.s32 1, %s1458_s7  ;;  %s286_s23 = sadd.s32 1, %s1462_s23   ;;  %s1462_s23 = sphi %s1460_s23, %s286_s23   ;;  %s1458_s7 = sphi %s1456_s7, %s1457_s7   ;;  %s1454_s5 = sphi %s1452_s5, %s303_s5   ;;  %s1450_s30 = sphi %s1448_s30, %s304_s30  }
  0x65   : >> { %293 = vst [vmem:[%s1450_s30] sm:$0xff] %v292_v6  ;;  %295 = vst [vmem:[%s1450_s30 + $0x10] sm:$0xff] %v294_v7  ;;  %p299_p6 = scmp.ge.s32.totalorder %s298_s4, %s1657_s8  ;;  %p285_p8 = scmp.ge.s32.totalorder %s286_s23, %s1657_s8 }
  0x66   : >> { %297 = vst [vmem:[%s1450_s30 + $0x20] sm:$0xff] %v296_v8 }
  0x67   : >> { %s2053_s4 = smov (%p299_p6, %s298_s4), 0  ;;  %288 = sbr.rel (!%p285_p8) target bundleno = 100 (0x64), region = 214 }
  0x68   : >> { %s994_s24 = sshll.u32 %s2053_s4, 3  ;;  %s1457_s7 = smov %s2053_s4  }
  0x69   : >> { %s303_s5 = scalar_lea.vmem %s1661_s10, %s994_s24   ;;  %s304_s30 = scalar_lea.vmem %s1664_s11, %s994_s24 [#allocation6]  }
  0x6e PF: > { %p2027_p10 = scmp.ne.s32.totalorder %s2020_s28, 0 }
  0x6f   : > { %p2028_p12 = scmp.ne.s32.totalorder (!%p2027_p10), %s2021_s29, 0 }
  0x70   : > { %313 = sbr.rel (%p2027_p10) target bundleno = 230 (0xe6), region = 80 }
  0x77   : > { %1397 = dma.done.wait (%p2028_p12), [#allocation3], 128  }
  0x78   : > { %1399 = vsyncadd (%p2028_p12), [#allocation3], 4294967168 }
  0x79   : > { %1401 = dma.done.wait (%p2028_p12), [#allocation5], 16  }
  0x7a   : > { %1403 = vsyncadd (%p2028_p12), [#allocation5], 4294967280  ;;  %s324_s19 = sand.u32 1, %s1406_s12  }
  0x7b   : > { %s1067_s22 = smul.u32 48, %s324_s19 }
  0x7d   : > { %s326_s26 = scalar_lea.vmem [#allocation6], %s1067_s22 }
  0x7e   : > { %330 = sfence }
  0x7f   : > { %s363_s28 = sld [smem:[#allocation2]]  ;;  %s1000_s27 = sld [smem:[#allocation2 + $0x1]]  ;;  %v1692_v9 = vld [vmem:[%s326_s26] sm:$0xff]  ;;  %v1694_v10 = vld [vmem:[%s326_s26 + $0x8] sm:$0xff]  ;;  %v1700_v11 = vld [vmem:[%s326_s26 + $0x10] sm:$0xff]  ;;  %vm387_vm0 = vcmask 146432  }
  0x80   : > { %s1001_s8 = sld [smem:[#allocation2 + $0x2]]  ;;  %s1686_s9 = sld [smem:[#allocation4]]  ;;  %v1702_v12 = vld [vmem:[%s326_s26 + $0x18] sm:$0xff]  ;;  %v1708_v13 = vld [vmem:[%s326_s26 + $0x20] sm:$0xff]  ;;  %v1710_v15 = vld [vmem:[%s326_s26 + $0x28] sm:$0xff] }
  0x81   : > { %s1688_s10 = sld [smem:[#allocation2 + $0x80]]  ;;  %s1690_s11 = sld [smem:[#allocation2 + $0x81]] }
  0x82   : > { %s1696_s29 = sld [smem:[#allocation2 + $0x82]]  ;;  %s1698_s30 = sld [smem:[#allocation4 + $0x1]] }
  0x83   : > { %s1704_s5 = sld [smem:[#allocation2 + $0x100]]  ;;  %s1706_s7 = sld [smem:[#allocation2 + $0x101]] }
  0x84   : > { %s1714_s23 = sld [smem:[#allocation2 + $0x102]]  ;;  %s1731_s24 = sld [smem:[#allocation2 + $0x180]] }
  0x85   : > { %v364_v14 = vstv %s363_s28  ;;  %v368_v17 = vstv %s1000_s27  ;;  %s1716_s4 = sld [smem:[#allocation4 + $0x2]]  ;;  %s1734_s22 = sld [smem:[#allocation2 + $0x181]] }
  0x86   : > { %v365_v16 = vmul.f32 %v364_v14, %v1692_v9  ;;  %v366_v18 = vmul.f32 %v364_v14, %v1694_v10  ;;  %v369_v19 = vmul.f32 %v368_v17, %v1700_v11  ;;  %v374_v20 = vstv %s1001_s8  ;;  %s1736_s26 = sld [smem:[#allocation2 + $0x182]]  ;;  %s1743_s28 = sshll.u32 %s324_s19, 7 }
  0x87   : > { %v380_v21 = vstv %s1686_s9  ;;  %v370_v22 = vmul.f32 %v368_v17, %v1702_v12  ;;  %v375_v23 = vmul.f32 %v374_v20, %v1708_v13  ;;  %v376_v24 = vmul.f32 %v374_v20, %v1710_v15  ;;  %s1746_s27 = sld [smem:[#allocation4 + $0x3]]  ;;  %s1751_s8 = sld [smem:[#allocation2 + $0x200]] }
  0x88   : > { %v391_v25 = vstv %s1688_s10  ;;  %v395_v26 = vstv %s1690_s11  ;;  %v371_v27 = vadd.f32 %v369_v19, %v365_v16  ;;  %v401_v31 = vstv %s1696_s29  ;;  %s1754_s12 = sld [smem:[#allocation2 + $0x201]]  ;;  %s1756_s19 = sld [smem:[#allocation2 + $0x202]] }
  0x89   : > { %v372_v28 = vadd.f32 %v370_v22, %v366_v18  ;;  %v392_v29 = vmul.f32 %v391_v25, %v1692_v9  ;;  %v396_v30 = vmul.f32 %v395_v26, %v1700_v11  ;;  %v407_v32 = vstv %s1698_s30  ;;  %s1761_s9 = sld [smem:[#allocation4 + $0x4]]  ;;  %s1765_s10 = scalar_lea.vmem [#allocation7], %s1743_s28  }
  0x8a   : > { %v393_v33 = vmul.f32 %v391_v25, %v1694_v10  ;;  %v397_v34 = vmul.f32 %v395_v26, %v1702_v12  ;;  %v377_v35 = vadd.f32 %v375_v23, %v371_v27  ;;  %v402_v38 = vmul.f32 %v401_v31, %v1708_v13  ;;  %s1774_s11 = sld [smem:[#allocation2 + $0x280]]  ;;  %s1777_s29 = sld [smem:[#allocation2 + $0x281]] }
  0x8b   : > { %v378_v36 = vadd.f32 %v376_v24, %v372_v28  ;;  %v398_v37 = vadd.f32 %v396_v30, %v392_v29  ;;  %v403_v40 = vmul.f32 %v401_v31, %v1710_v15  ;;  %v418_v41 = vstv %s1704_s5  ;;  %s1785_s30 = sld [smem:[#allocation2 + $0x282]]  ;;  %s1790_s5 = sld [smem:[#allocation4 + $0x5]] }
  0x8c   : > { %v399_v39 = vadd.f32 %v397_v34, %v393_v33  ;;  %v422_v42 = vstv %s1706_s7  ;;  %v381_v43 = vadd.f32 %v380_v21, %v377_v35  ;;  %v419_v46 = vmul.f32 %v418_v41, %v1692_v9  ;;  %s1796_s7 = sld [smem:[#allocation2 + $0x300]]  ;;  %s1826_s28 = sld [smem:[#allocation2 + $0x382]] }
  0x8d   : > { %v382_v44 = vadd.f32 %v380_v21, %v378_v36  ;;  %v404_v45 = vadd.f32 %v402_v38, %v398_v37  ;;  %v423_v48 = vmul.f32 %v422_v42, %v1700_v11  ;;  %v428_v49 = vstv %s1714_s23  ;;  %s1801_s23 = sld [smem:[#allocation2 + $0x301]]  ;;  %p2029_p0 = scmp.ne.s32.totalorder %s2019_s25, 0 }
  0x8e   : > { %v405_v47 = vadd.f32 %v403_v40, %v399_v39  ;;  %v434_v50 = vstv %s1716_s4  ;;  %v383_v51 = vmax.f32 %v381_v43, 0.0  ;;  %v429_v54 = vmul.f32 %v428_v49, %v1708_v13  ;;  %s1807_s4 = sld [smem:[#allocation2 + $0x302]] }
  0x8f   : > { %v384_v52 = vmax.f32 %v382_v44, 0.0  ;;  %v408_v53 = vadd.f32 %v407_v32, %v404_v45  ;;  %v425_v56 = vadd.f32 %v423_v48, %v419_v46  ;;  %v420_v57 = vmul.f32 %v418_v41, %v1694_v10 }
  0x90   : > { %v409_v55 = vadd.f32 %v407_v32, %v405_v47  ;;  %v424_v58 = vmul.f32 %v422_v42, %v1702_v12  ;;  %v385_v59 = vmin.f32 %v383_v51, 1.0  ;;  %v430_v62 = vmul.f32 %v428_v49, %v1710_v15 }
  0x91   : > { %v386_v60 = vmin.f32 %v384_v52, 1.0  ;;  %v410_v61 = vmax.f32 %v408_v53, 0.0  ;;  %v431_v0 = vadd.f32 %v429_v54, %v425_v56  ;;  %v445_v2 = vstv %s1731_s24  ;;  %s1811_s24 = sld [smem:[#allocation4 + $0x6]] }
  0x92   : > { %v411_v63 = vmax.f32 %v409_v55, 0.0  ;;  %v426_v1 = vadd.f32 %v424_v58, %v420_v57  ;;  %388 = vst.msk [vmem:[%s1765_s10] sm:$0xff] %vm387_vm0, %v385_v59  ;;  %v446_v4 = vmul.f32 %v445_v2, %v1692_v9  ;;  %v449_v5 = vstv %s1734_s22  ;;  %s1819_s22 = sld [smem:[#allocation2 + $0x380]] }
  0x93   : > { %389 = vst.msk [vmem:[%s1765_s10 + $0x8] sm:$0xff] %vm387_vm0, %v386_v60  ;;  %v412_v3 = vmin.f32 %v410_v61, 1.0  ;;  %v455_v6 = vstv %s1736_s26  ;;  %v435_v8 = vadd.f32 %v434_v50, %v431_v0  ;;  %v450_v16 = vmul.f32 %v449_v5, %v1700_v11  ;;  %s1823_s26 = sld [smem:[#allocation2 + $0x381]] }
  0x94   : > { %v413_v7 = vmin.f32 %v411_v63, 1.0  ;;  %v432_v14 = vadd.f32 %v430_v62, %v426_v1  ;;  %v456_v17 = vmul.f32 %v455_v6, %v1708_v13  ;;  %v461_v18 = vstv %s1746_s27  ;;  %s1839_s27 = sld [smem:[#allocation4 + $0x7]] }
  0x95   : > { %1006 = vst.msk [vmem:[%s1765_s10 + $0x10] sm:$0xff] %vm387_vm0, %v412_v3  ;;  %v447_v19 = vmul.f32 %v445_v2, %v1694_v10  ;;  %v451_v20 = vmul.f32 %v449_v5, %v1702_v12  ;;  %v437_v21 = vmax.f32 %v435_v8, 0.0  ;;  %v452_v23 = vadd.f32 %v450_v16, %v446_v4 }
  0x96   : > { %1007 = vst.msk [vmem:[%s1765_s10 + $0x18] sm:$0xff] %vm387_vm0, %v413_v7  ;;  %v436_v22 = vadd.f32 %v434_v50, %v432_v14  ;;  %v457_v24 = vmul.f32 %v455_v6, %v1710_v15  ;;  %v472_v26 = vstv %s1751_s8  ;;  %v476_v27 = vstv %s1754_s12  ;;  %s1045_s8 = sshll.u32 (%p2029_p0), %s1414_s14, 1  ;;  %s1068_s12 = smul.u32 (%p2029_p0), 24, %s1418_s15 }
  0x97   : > { %v453_v25 = vadd.f32 %v451_v20, %v447_v19  ;;  %v482_v28 = vstv %s1756_s19  ;;  %v439_v29 = vmin.f32 %v437_v21, 1.0  ;;  %v458_v31 = vadd.f32 %v456_v17, %v452_v23  ;;  %s587_s19 = ssub.s32 (%p2029_p0), 3, %s1045_s8 }
  0x98   : > { %v438_v30 = vmax.f32 %v436_v22, 0.0  ;;  %v473_v32 = vmul.f32 %v472_v26, %v1692_v9  ;;  %v477_v34 = vmul.f32 %v476_v27, %v1700_v11  ;;  %v483_v35 = vmul.f32 %v482_v28, %v1708_v13  ;;  %p588_p2 = scmp.lt.s32.totalorder (%p2029_p0), %s587_s19, 2 }
  0x99   : > { %v459_v33 = vadd.f32 %v457_v24, %v453_v25  ;;  %v488_v36 = vstv %s1761_s9  ;;  %1012 = vst.msk [vmem:[%s1765_s10 + $0x20] sm:$0xff] %vm387_vm0, %v439_v29  ;;  %v462_v38 = vadd.f32 %v461_v18, %v458_v31  ;;  %v474_v39 = vmul.f32 %v472_v26, %v1694_v10  ;;  %s593_s9 = sadd.s32 (%p2029_p0), %s1068_s12, %s1045_s8 }
  0x9a   : > { %v440_v37 = vmin.f32 %v438_v30, 1.0  ;;  %v478_v40 = vmul.f32 %v476_v27, %v1702_v12  ;;  %v479_v42 = vadd.f32 %v477_v34, %v473_v32  ;;  %v484_v43 = vmul.f32 %v482_v28, %v1710_v15 }
  0x9b   : > { %v463_v41 = vadd.f32 %v461_v18, %v459_v33  ;;  %v499_v44 = vstv %s1774_s11  ;;  %v464_v45 = vmax.f32 %v462_v38, 0.0  ;;  %v503_v48 = vstv %s1777_s29  ;;  %s1048_s11 = sshll.u32 (%p2029_p0), %s593_s9, 3 }
  0x9c   : > { %1013 = vst.msk [vmem:[%s1765_s10 + $0x28] sm:$0xff] %vm387_vm0, %v440_v37  ;;  %v480_v46 = vadd.f32 %v478_v40, %v474_v39  ;;  %v500_v47 = vmul.f32 %v499_v44, %v1692_v9  ;;  %v485_v50 = vadd.f32 %v483_v35, %v479_v42  ;;  %v504_v51 = vmul.f32 %v503_v48, %v1700_v11 }
  0x9d   : > { %v465_v49 = vmax.f32 %v463_v41, 0.0  ;;  %v509_v52 = vstv %s1785_s30  ;;  %v466_v53 = vmin.f32 %v464_v45, 1.0  ;;  %v515_v56 = vstv %s1790_s5  ;;  %s1881_s5 = scalar_lea.vmem (%p2029_p0), %s2014_s3, %s1048_s11  }
  0x9e   : > { %v486_v54 = vadd.f32 %v484_v43, %v480_v46  ;;  %v510_v55 = vmul.f32 %v509_v52, %v1708_v13  ;;  %v489_v58 = vadd.f32 %v488_v36, %v485_v50  ;;  %v506_v59 = vadd.f32 %v504_v51, %v500_v47 }
  0x9f   : > { %v467_v57 = vmin.f32 %v465_v49, 1.0  ;;  %v501_v60 = vmul.f32 %v499_v44, %v1694_v10  ;;  %1018 = vst.msk [vmem:[%s1765_s10 + $0x30] sm:$0xff] %vm387_vm0, %v466_v53  ;;  %v505_v62 = vmul.f32 %v503_v48, %v1702_v12  ;;  %v511_v63 = vmul.f32 %v509_v52, %v1710_v15 }
  0xa0   : > { %v490_v61 = vadd.f32 %v488_v36, %v486_v54  ;;  %v526_v0 = vstv %s1796_s7  ;;  %v491_v1 = vmax.f32 %v489_v58, 0.0  ;;  %v512_v2 = vadd.f32 %v510_v55, %v506_v59 }
  0xa1   : > { %1019 = vst.msk [vmem:[%s1765_s10 + $0x38] sm:$0xff] %vm387_vm0, %v467_v57  ;;  %v527_v3 = vmul.f32 %v526_v0, %v1692_v9  ;;  %v530_v4 = vstv %s1801_s23  ;;  %v507_v6 = vadd.f32 %v505_v62, %v501_v60  ;;  %v536_v8 = vstv %s1807_s4 }
  0xa2   : > { %v492_v5 = vmax.f32 %v490_v61, 0.0  ;;  %v531_v7 = vmul.f32 %v530_v4, %v1700_v11  ;;  %v493_v14 = vmin.f32 %v491_v1, 1.0  ;;  %v516_v16 = vadd.f32 %v515_v56, %v512_v2 }
  0xa3   : > { %v537_v17 = vmul.f32 %v536_v8, %v1708_v13  ;;  %v542_v18 = vstv %s1811_s24  ;;  %v513_v20 = vadd.f32 %v511_v63, %v507_v6  ;;  %v528_v22 = vmul.f32 %v526_v0, %v1694_v10 }
  0xa4   : > { %v494_v19 = vmin.f32 %v492_v5, 1.0  ;;  %v533_v21 = vadd.f32 %v531_v7, %v527_v3  ;;  %1024 = vst.msk [vmem:[%s1765_s10 + $0x40] sm:$0xff] %vm387_vm0, %v493_v14  ;;  %v518_v23 = vmax.f32 %v516_v16, 0.0  ;;  %v532_v24 = vmul.f32 %v530_v4, %v1702_v12 }
  0xa5   : > { %v538_v25 = vmul.f32 %v536_v8, %v1710_v15  ;;  %v553_v26 = vstv %s1819_s22  ;;  %v517_v27 = vadd.f32 %v515_v56, %v513_v20  ;;  %v557_v30 = vstv %s1823_s26 }
  0xa6   : > { %1025 = vst.msk [vmem:[%s1765_s10 + $0x48] sm:$0xff] %vm387_vm0, %v494_v19  ;;  %v539_v28 = vadd.f32 %v537_v17, %v533_v21  ;;  %v554_v29 = vmul.f32 %v553_v26, %v1692_v9  ;;  %v520_v31 = vmin.f32 %v518_v23, 1.0  ;;  %v534_v32 = vadd.f32 %v532_v24, %v528_v22 }
  0xa7   : > { %v558_v33 = vmul.f32 %v557_v30, %v1700_v11  ;;  %v563_v34 = vstv %s1826_s28  ;;  %v519_v35 = vmax.f32 %v517_v27, 0.0  ;;  %v555_v40 = vmul.f32 %v553_v26, %v1694_v10 }
  0xa8   : > { %v543_v36 = vadd.f32 %v542_v18, %v539_v28  ;;  %v564_v37 = vmul.f32 %v563_v34, %v1708_v13  ;;  %1030 = vst.msk [vmem:[%s1765_s10 + $0x50] sm:$0xff] %vm387_vm0, %v520_v31  ;;  %v540_v38 = vadd.f32 %v538_v25, %v534_v32  ;;  %v559_v9 = vmul.f32 %v557_v30, %v1702_v12 }
  0xa9   : > { %v560_v39 = vadd.f32 %v558_v33, %v554_v29  ;;  %v521_v41 = vmin.f32 %v519_v35, 1.0  ;;  %v569_v43 = vstv %s1839_s27  ;;  %v565_v11 = vmul.f32 %v563_v34, %v1710_v15 }
  0xaa   : > { %v545_v42 = vmax.f32 %v543_v36, 0.0  ;;  %v544_v44 = vadd.f32 %v542_v18, %v540_v38  ;;  %v561_v13 = vadd.f32 %v559_v9, %v555_v40 }
  0xab   : > { %v566_v45 = vadd.f32 %v564_v37, %v560_v39  ;;  %1031 = vst.msk [vmem:[%s1765_s10 + $0x58] sm:$0xff] %vm387_vm0, %v521_v41 }
  0xac   : > { %v547_v46 = vmin.f32 %v545_v42, 1.0  ;;  %v546_v47 = vmax.f32 %v544_v44, 0.0  ;;  %v567_v49 = vadd.f32 %v565_v11, %v561_v13 }
  0xad   : > { %v570_v48 = vadd.f32 %v569_v43, %v566_v45 }
  0xae   : > { %1036 = vst.msk [vmem:[%s1765_s10 + $0x60] sm:$0xff] %vm387_vm0, %v547_v46  ;;  %v548_v10 = vmin.f32 %v546_v47, 1.0  ;;  %v571_v50 = vadd.f32 %v569_v43, %v567_v49  ;;  %585 = sbr.rel (!%p2029_p0) target bundleno = 230 (0xe6), region = 96 }
  0xaf   : > { %v572_v12 = vmax.f32 %v570_v48, 0.0 }
  0xb0   : > { %1037 = vst.msk [vmem:[%s1765_s10 + $0x68] sm:$0xff] %vm387_vm0, %v548_v10  ;;  %v573_v15 = vmax.f32 %v571_v50, 0.0 }
  0xb1   : > { %v574_v51 = vmin.f32 %v572_v12, 1.0 }
  0xb2   : > { %v575_v52 = vmin.f32 %v573_v15, 1.0 }
  0xb3   : > { %1042 = vst.msk [vmem:[%s1765_s10 + $0x70] sm:$0xff] %vm387_vm0, %v574_v51 }
  0xb4   : > { %1043 = vst.msk [vmem:[%s1765_s10 + $0x78] sm:$0xff] %vm387_vm0, %v575_v52 }
  0xb5   : > { %s2055_s19 = smov (!%p588_p2, %s587_s19), 2 }
  0xb6   : > { %s1046_s7 = sshll.u32 %s2055_s19, 10 }
  0xb7   : > { %p1049_p3 = scmp.eq.s32.totalorder %s1046_s7, 0 }
  0xb8   : > { %s1885_s25 = sshrl.u32 (!%p1049_p3), %s2055_s19, 1 }
  0xb9   : > { %598 = sbr.rel (%p1049_p3) target bundleno = 230 (0xe6), region = 100  ;;  %p1050_p4 = scmp.le.s32.totalorder (!%p1049_p3), %s1885_s25, 0 }
  0xc0   : > { %904 = sbr.rel (%p1050_p4) target bundleno = 209 (0xd1), region = 219  ;;  %s2030_s14 = smov (!%p1050_p4), %s1881_s5 }
  0xc1   : > { %s2031_s15 = smov (!%p1050_p4), %s1765_s10  ;;  %s1894_s23 = smov (!%p1050_p4), 0  }
  0xc2   : > { %s1896_s4 = smov (!%p1050_p4), 0  }
  0xc7 LB: >> { %v704_v53 = vld [vmem:[%s1470_s15] sm:$0xff]  ;;  %v706_v54 = vld [vmem:[%s1470_s15 + $0x8] sm:$0xff]  ;;  %v708_v55 = vld [vmem:[%s1470_s15 + $0x10] sm:$0xff]  ;;  %s736_s24 = sadd.s32 1, %s1474_s23  ;;  %s698_s4 = sadd.s32 1, %s1478_s4   ;;  %s1478_s4 = sphi %s1896_s4, %s698_s4   ;;  %s1474_s23 = sphi %s1894_s23, %s2032_s23   ;;  %s1470_s15 = sphi %s2031_s15, %s741_s15   ;;  %s1466_s14 = sphi %s2030_s14, %s742_s14  }
  0xc8   : >> { %705 = vst [vmem:[%s1466_s14] sm:$0xff] %v704_v53  ;;  %707 = vst [vmem:[%s1466_s14 + $0x8] sm:$0xff] %v706_v54  ;;  %v710_v56 = vld [vmem:[%s1470_s15 + $0x18] sm:$0xff]  ;;  %v712_v57 = vld [vmem:[%s1470_s15 + $0x20] sm:$0xff]  ;;  %p737_p5 = scmp.ge.s32.totalorder %s736_s24, %s1885_s25  ;;  %p697_p7 = scmp.ge.s32.totalorder %s698_s4, %s1885_s25 }
  0xc9   : >> { %709 = vst [vmem:[%s1466_s14 + $0x18] sm:$0xff] %v708_v55  ;;  %v714_v58 = vld [vmem:[%s1470_s15 + $0x28] sm:$0xff]  ;;  %711 = vst [vmem:[%s1466_s14 + $0x20] sm:$0xff] %v710_v56  ;;  %v716_v59 = vld [vmem:[%s1470_s15 + $0x30] sm:$0xff] }
  0xca   : >> { %713 = vst [vmem:[%s1466_s14 + $0x30] sm:$0xff] %v712_v57  ;;  %715 = vst [vmem:[%s1466_s14 + $0x38] sm:$0xff] %v714_v58  ;;  %v718_v60 = vld [vmem:[%s1470_s15 + $0x38] sm:$0xff]  ;;  %v720_v61 = vld [vmem:[%s1470_s15 + $0x40] sm:$0xff]  ;;  %s2057_s24 = smov (%p737_p5, %s736_s24), 0  ;;  %700 = sbr.rel (!%p697_p7) target bundleno = 199 (0xc7), region = 225 }
  0xcb   : >> { %717 = vst [vmem:[%s1466_s14 + $0x48] sm:$0xff] %v716_v59  ;;  %719 = vst [vmem:[%s1466_s14 + $0x50] sm:$0xff] %v718_v60  ;;  %v722_v62 = vld [vmem:[%s1470_s15 + $0x48] sm:$0xff]  ;;  %v724_v63 = vld [vmem:[%s1470_s15 + $0x50] sm:$0xff]  ;;  %s1051_s22 = sshll.u32 %s2057_s24, 4  ;;  %s2032_s23 = smov %s2057_s24 }
  0xcc   : >> { %721 = vst [vmem:[%s1466_s14 + $0x60] sm:$0xff] %v720_v61  ;;  %v726_v0 = vld [vmem:[%s1470_s15 + $0x58] sm:$0xff]  ;;  %723 = vst [vmem:[%s1466_s14 + $0x68] sm:$0xff] %v722_v62  ;;  %v728_v1 = vld [vmem:[%s1470_s15 + $0x60] sm:$0xff] }
  0xcd   : >> { %725 = vst [vmem:[%s1466_s14 + $0x78] sm:$0xff] %v724_v63  ;;  %727 = vst [vmem:[%s1466_s14 + $0x80] sm:$0xff] %v726_v0  ;;  %v730_v2 = vld [vmem:[%s1470_s15 + $0x68] sm:$0xff]  ;;  %v732_v3 = vld [vmem:[%s1470_s15 + $0x70] sm:$0xff] }
  0xce   : >> { %729 = vst [vmem:[%s1466_s14 + $0x90] sm:$0xff] %v728_v1  ;;  %731 = vst [vmem:[%s1466_s14 + $0x98] sm:$0xff] %v730_v2  ;;  %v734_v4 = vld [vmem:[%s1470_s15 + $0x78] sm:$0xff]  ;;  %s741_s15 = scalar_lea.vmem %s1765_s10, %s1051_s22 [#allocation7]  }
  0xcf   : >> { %733 = vst [vmem:[%s1466_s14 + $0xa8] sm:$0xff] %v732_v3  ;;  %735 = vst [vmem:[%s1466_s14 + $0xb0] sm:$0xff] %v734_v4  ;;  %s742_s14 = scalar_lea.vmem %s1881_s5, %s1051_s22  }
  0xd1 PF: > { %s1954_s26 = sand.u32 1, %s2055_s19   ;;  %s1063_s28 = sshll.u32 %s1885_s25, 4 }
  0xd2   : > { %s1958_s27 = scalar_lea.vmem %s1765_s10, %s1063_s28 [#allocation7]   ;;  %s1961_s8 = scalar_lea.vmem %s1881_s5, %s1063_s28  }
  0xd3   : > { %p1056_p9 = scmp.le.s32.totalorder %s1954_s26, 0 }
  0xd4   : > { %s2033_s12 = smov (!%p1056_p9), %s1961_s8  ;;  %s2034_s9 = smov (!%p1056_p9), %s1958_s27 }
  0xd5   : > { %918 = sbr.rel (%p1056_p9) target bundleno = 230 (0xe6), region = 230  ;;  %s1970_s11 = smov (!%p1056_p9), 0  }
  0xd6   : > { %s1972_s29 = smov (!%p1056_p9), 0  }
  0xdc LB: >> { %v759_v5 = vld [vmem:[%s1486_s9] sm:$0xff]  ;;  %v761_v6 = vld [vmem:[%s1486_s9 + $0x10] sm:$0xff]  ;;  %s775_s10 = sadd.s32 1, %s1490_s11  ;;  %s753_s29 = sadd.s32 1, %s1494_s29   ;;  %s1494_s29 = sphi %s1972_s29, %s753_s29   ;;  %s1490_s11 = sphi %s1970_s11, %s2035_s11   ;;  %s1486_s9 = sphi %s2034_s9, %s780_s9   ;;  %s1482_s12 = sphi %s2033_s12, %s781_s12  }
  0xdd   : >> { %v763_v7 = vld [vmem:[%s1486_s9 + $0x20] sm:$0xff]  ;;  %760 = vst [vmem:[%s1482_s12] sm:$0xff] %v759_v5  ;;  %762 = vst [vmem:[%s1482_s12 + $0x18] sm:$0xff] %v761_v6  ;;  %v765_v8 = vld [vmem:[%s1486_s9 + $0x30] sm:$0xff]  ;;  %p776_p11 = scmp.ge.s32.totalorder %s775_s10, %s1954_s26  ;;  %p752_p13 = scmp.ge.s32.totalorder %s753_s29, %s1954_s26 }
  0xde   : >> { %764 = vst [vmem:[%s1482_s12 + $0x30] sm:$0xff] %v763_v7  ;;  %v767_v14 = vld [vmem:[%s1486_s9 + $0x40] sm:$0xff]  ;;  %v769_v16 = vld [vmem:[%s1486_s9 + $0x50] sm:$0xff]  ;;  %766 = vst [vmem:[%s1482_s12 + $0x48] sm:$0xff] %v765_v8 }
  0xdf   : >> { %768 = vst [vmem:[%s1482_s12 + $0x60] sm:$0xff] %v767_v14  ;;  %770 = vst [vmem:[%s1482_s12 + $0x78] sm:$0xff] %v769_v16  ;;  %v771_v17 = vld [vmem:[%s1486_s9 + $0x60] sm:$0xff]  ;;  %v773_v18 = vld [vmem:[%s1486_s9 + $0x70] sm:$0xff]  ;;  %s2059_s10 = smov (%p776_p11, %s775_s10), 0  ;;  %755 = sbr.rel (!%p752_p13) target bundleno = 220 (0xdc), region = 236 }
  0xe0   : >> { %772 = vst [vmem:[%s1482_s12 + $0x90] sm:$0xff] %v771_v17  ;;  %774 = vst [vmem:[%s1482_s12 + $0xa8] sm:$0xff] %v773_v18  ;;  %s1057_s19 = sshll.u32 %s2059_s10, 3  ;;  %s2035_s11 = smov %s2059_s10 }
  0xe1   : >> { %s780_s9 = scalar_lea.vmem %s1958_s27, %s1057_s19 [#allocation7]   ;;  %s781_s12 = scalar_lea.vmem %s1961_s8, %s1057_s19  }
  0xe6 PF: > { %s15_s18 = sadd.s32 1, %s1430_s18   ;;  %s2036_s12 = smov %s1410_s13 }
  0xe7   : > { %p12_p1 = scmp.ge.s32.totalorder %s15_s18, 6   ;;  %s2037_s13 = smov %s1593_s6 }
  0xe8   : > { %s2038_s14 = smov %s1422_s16  ;;  %s2039_s15 = smov %s1426_s17 }
  0xe9   : > { %s2040_s16 = smov %s2043_s20  ;;  %s2041_s17 = smov %s2047_s21 }
  0xea   :  { %14 = sbr.rel (!%p12_p1) target bundleno = 5 (0x5), region = 247 }
  0xf1   :  { %797 = vsyncpa [#allocation3], 1 }
  0xf2   :  { %799 = vsyncpa [#allocation3 + $0x1], 1 }
  0xf3   :  { %800 = vsyncpa [#allocation5], 1 }

</bundles_post_ra>
